<compile_context>
chip_gen: v7x
topology: tpu7x:2x2x1
jax: 0.10.0
libtpu: 0.0.40
codegen_flags: <defaults>
</compile_context>

<pallas_src>
import jax
import jax.numpy as jnp
from jax.experimental import pallas as pl
from jax.experimental.pallas import tpu as pltpu


LN_EPS = 1e-12
NEG_INF = -1e9


# ------------------------------- small helpers ------------------------------

def _detect_vmem_limit():
    """Generation-aware VMEM budget (~75% of physical, capped at 100 MiB)."""
    try:
        cap = int(pltpu.get_tpu_info().vmem_capacity_bytes)
        if cap >= 32 * 1024 * 1024:
            return min((cap * 3) // 4, 100 * 1024 * 1024)
    except Exception:
        pass
    return 48 * 1024 * 1024          # safe fallback (fits v7x's 64 MiB physical)


VMEM_LIMIT = _detect_vmem_limit()


def _cparams(dim_sem=None):
    return pltpu.CompilerParams(dimension_semantics=dim_sem,
                                vmem_limit_bytes=VMEM_LIMIT)


def _full_spec(shape):
    shape = tuple(shape)
    return pl.BlockSpec(shape, lambda: (0,) * len(shape))


def _pick_sublane_tile(dim, target=512, align=16):
    """Largest multiple-of-`align` tile <= target dividing dim, else full dim.
    align=16 keeps bf16 sublane packing intact."""
    if dim <= target:
        return dim
    t = (target // align) * align
    while t >= align:
        if dim % t == 0:
            return t
        t -= align
    # TODO(synk): pl.cdiv grid + masked edge rather than falling back to full dim.
    return dim


def _pick_lane_tile(dim, target):
    """Lane-dim tile: a multiple of 128 dividing dim, or the whole dim.
    Never returns a lane-narrow / misaligned tile (keeps stores unmasked)."""
    if dim <= target or dim % 128 != 0:
        return dim
    t = (target // 128) * 128
    while t >= 128:
        if dim % t == 0:
            return t
        t -= 128
    return dim


# ----------------------------- Pallas kernels ------------------------------

def _make_matmul_kernel(gelu):
    """Tiled y = x @ w + b (optional GELU).  grid=(Mt, Nt, Kt), K innermost."""
    def kernel(x_ref, w_ref, b_ref, o_ref, acc_ref):
        k = pl.program_id(2)

        @pl.when(k == 0)
        def _():
            acc_ref[...] = jnp.zeros_like(acc_ref)

        # operands already bf16 -> no per-step casts
        acc_ref[...] += jnp.dot(x_ref[...], w_ref[...],
                                preferred_element_type=jnp.float32)

        @pl.when(k == pl.num_programs(2) - 1)
        def _():
            y = acc_ref[...] + b_ref[...]
            if gelu:
                # tanh-approx GELU (EUP friendly); exact erf-GELU differs negligibly
                y = jax.nn.gelu(y, approximate=True)
            o_ref[...] = y.astype(o_ref.dtype)
    return kernel


def _make_matmul_ln_kernel(gelu, has_residual):
    """LayerNorm((x @ w + b [GELU]) [+ residual]).  Whole-K resident weight,
    grid=(Mt,) only; f32 math, bf16 output."""
    def kernel(*refs):
        if has_residual:
            x_ref, w_ref, b_ref, r_ref, g_ref, beta_ref, o_ref = refs
        else:
            x_ref, w_ref, b_ref, g_ref, beta_ref, o_ref = refs
            r_ref = None
        y = jnp.dot(x_ref[...], w_ref[...],
                    preferred_element_type=jnp.float32) + b_ref[...]
        if gelu:
            y = jax.nn.gelu(y, approximate=True)
        if has_residual:
            y = y + r_ref[...].astype(jnp.float32)
        mu = jnp.mean(y, axis=-1, keepdims=True)
        var = jnp.mean((y - mu) ** 2, axis=-1, keepdims=True)
        o_ref[...] = ((y - mu) * jax.lax.rsqrt(var + LN_EPS)
                      * g_ref[...] + beta_ref[...]).astype(o_ref.dtype)
    return kernel


def _make_attention_kernel(head_dim):
    """One (batch, head-pair) tile of multi-head attention.

    Q/K/V refs are (1, S, 2*head_dim) bf16 blocks the BlockSpec sliced out of
    the fused (B, S, 3H) QKV tensor; the 1/sqrt(Dh) scale is baked into wqkv.
    TODO(synk): flash-style kv-tiled online softmax for S >> 128.
    """
    def kernel(mask_ref, q_ref, k_ref, v_ref, o_ref):
        bias = (1.0 - mask_ref[0]) * NEG_INF          # (1, S) key-position bias
        q = q_ref[0]                                  # (S, 2*Dh) bf16
        k = k_ref[0]
        v = v_ref[0]
        ctxs = []
        for h in range(2):                            # static unroll over the pair
            sl = slice(h * head_dim, (h + 1) * head_dim)
            s = jax.lax.dot_general(q[:, sl], k[:, sl],
                                    (((1,), (1,)), ((), ())),
                                    preferred_element_type=jnp.float32)
            s = s + bias                              # broadcast over query rows
            m = jnp.max(s, axis=-1, keepdims=True)
            p = jnp.exp(s - m)
            p = p * pl.reciprocal(jnp.sum(p, axis=-1, keepdims=True), approx=True)
            ctxs.append(jnp.dot(p.astype(jnp.bfloat16), v[:, sl],
                                preferred_element_type=jnp.float32))
        # one lane-dense (S, 2*Dh) store per head pair (128 wide at BERT Dh=64)
        o_ref[0] = jnp.concatenate(ctxs, axis=-1).astype(o_ref.dtype)
    return kernel


def _enc_embed_kernel(word_ref, pos_ref, g_ref, b_ref, o_ref):
    # LayerNorm(word_emb + pos_emb), per batch element; bf16 output
    y = word_ref[0] + pos_ref[...]
    mu = jnp.mean(y, axis=-1, keepdims=True)
    var = jnp.mean((y - mu) ** 2, axis=-1, keepdims=True)
    o_ref[0] = ((y - mu) * jax.lax.rsqrt(var + LN_EPS)
                * g_ref[...] + b_ref[...]).astype(o_ref.dtype)


def _dec_embed_kernel(enc_ref, row_ref, encpos_ref, decpos_ref, type_ref,
                      g_ref, b_ref, o_ref):
    # dec_input[:,0,:] = distributor(z); dec_input[:,1:,:] = enc[:,1:,:]
    # dec_input -= encoder position embeddings; then BERT decoder embeddings:
    # += decoder position + token-type-0 embeddings; single LayerNorm pass.
    adj = decpos_ref[...] + type_ref[...] - encpos_ref[...]          # (S, H) f32
    enc = enc_ref[0].astype(jnp.float32)                             # (S, H)
    row0 = row_ref[0].astype(jnp.float32)                            # (1, H)
    S = enc.shape[0]
    is_row0 = jax.lax.broadcasted_iota(jnp.int32, (S, 1), 0) == 0
    y = jnp.where(is_row0, row0, enc) + adj
    mu = jnp.mean(y, axis=-1, keepdims=True)
    var = jnp.mean((y - mu) ** 2, axis=-1, keepdims=True)
    o_ref[0] = ((y - mu) * jax.lax.rsqrt(var + LN_EPS)
                * g_ref[...] + b_ref[...]).astype(o_ref.dtype)


def _vae_bottleneck_kernel(cls_ref, wmu_ref, bmu_ref, wrho_ref, brho_ref,
                           eps_ref, wd_ref, bd_ref,
                           zmu_ref, zrho_ref, row_ref):
    # cls: (B, H) -> z_mu, z_rho: (B, L); distributor row: (B, H).  f32 path.
    cls = cls_ref[...].astype(jnp.float32)
    z_mu = jnp.dot(cls, wmu_ref[...],
                   preferred_element_type=jnp.float32) + bmu_ref[...]
    z_rho = jnp.dot(cls, wrho_ref[...],
                    preferred_element_type=jnp.float32) + brho_ref[...]
    # numerically-stable softplus
    sp = jnp.maximum(z_rho, 0.0) + jnp.log(1.0 + jnp.exp(-jnp.abs(z_rho)))
    z = z_mu + sp * eps_ref[...]
    zmu_ref[...] = z_mu
    zrho_ref[...] = z_rho
    row_ref[...] = jnp.dot(z, wd_ref[...],
                           preferred_element_type=jnp.float32) + bd_ref[...]


# ------------------------------ kernel wrappers -----------------------------

def linear(x, w, b, gelu=False, out_dtype=jnp.bfloat16, tn_target=512):
    """y = x @ w + b (optional GELU), tiled (M, N, K), f32 accumulation."""
    lead = x.shape[:-1]
    K = x.shape[-1]
    N = w.shape[1]
    x2 = x.reshape(-1, K)
    if x2.dtype != jnp.bfloat16:
        x2 = x2.astype(jnp.bfloat16)
    M = x2.shape[0]
    tm = _pick_sublane_tile(M, 512, 16)
    tn = N if N <= max(tn_target, 1024) else _pick_lane_tile(N, tn_target)
    tk = K if K <= 1024 else _pick_lane_tile(K, 512)
    grid = (M // tm, N // tn, K // tk)
    y = pl.pallas_call(
        _make_matmul_kernel(gelu),
        out_shape=jax.ShapeDtypeStruct((M, N), out_dtype),
        grid=grid,
        in_specs=[
            pl.BlockSpec((tm, tk), lambda i, j, k: (i, k)),
            pl.BlockSpec((tk, tn), lambda i, j, k: (k, j)),
            pl.BlockSpec((1, tn), lambda i, j, k: (0, j)),
        ],
        out_specs=pl.BlockSpec((tm, tn), lambda i, j, k: (i, j)),
        scratch_shapes=[pltpu.VMEM((tm, tn), jnp.float32)],
        compiler_params=_cparams(("parallel", "parallel", "arbitrary")),
    )(x2, w, b.reshape(1, -1))
    return y.reshape(lead + (N,))


def linear_ln(x, w, b, gamma, beta, residual=None, gelu=False):
    """LayerNorm((x @ w + b [GELU]) [+ residual]); resident whole-(K,N) weight,
    grid over M tiles only."""
    lead = x.shape[:-1]
    K = x.shape[-1]
    N = w.shape[1]
    x2 = x.reshape(-1, K)
    if x2.dtype != jnp.bfloat16:
        x2 = x2.astype(jnp.bfloat16)
    M = x2.shape[0]
    tm = _pick_sublane_tile(M, 512, 16)
    grid = (M // tm,)

    in_specs = [
        pl.BlockSpec((tm, K), lambda i: (i, 0)),
        pl.BlockSpec((K, N), lambda i: (0, 0)),      # resident weight block
        pl.BlockSpec((1, N), lambda i: (0, 0)),
    ]
    args = [x2, w, b.reshape(1, -1)]
    if residual is not None:
        r2 = residual.reshape(-1, N)
        if r2.dtype != jnp.bfloat16:
            r2 = r2.astype(jnp.bfloat16)
        in_specs.append(pl.BlockSpec((tm, N), lambda i: (i, 0)))
        args.append(r2)
    in_specs += [pl.BlockSpec((1, N), lambda i: (0, 0)),
                 pl.BlockSpec((1, N), lambda i: (0, 0))]
    args += [gamma.reshape(1, -1), beta.reshape(1, -1)]

    y = pl.pallas_call(
        _make_matmul_ln_kernel(gelu, residual is not None),
        out_shape=jax.ShapeDtypeStruct((M, N), jnp.bfloat16),
        grid=grid,
        in_specs=in_specs,
        out_specs=pl.BlockSpec((tm, N), lambda i: (i, 0)),
        compiler_params=_cparams(("parallel",)),
    )(*args)
    return y.reshape(lead + (N,))


def multi_head_attention(x, mask_b1s, p, prefix, num_heads):
    B, S, H = x.shape
    Dh = H // num_heads
    assert num_heads % 2 == 0, "attention kernel processes heads in pairs"
    npair = num_heads // 2
    Dp = 2 * Dh                      # 128 lanes at BERT head_dim=64
    qkv = linear(x, p[f"{prefix}_wqkv"], p[f"{prefix}_bqkv"])     # (B, S, 3H) bf16
    ctx = pl.pallas_call(
        _make_attention_kernel(Dh),
        out_shape=jax.ShapeDtypeStruct((B, S, H), jnp.bfloat16),
        grid=(B, npair),
        in_specs=[
            pl.BlockSpec((1, 1, S), lambda b, pr: (b, 0, 0)),                 # mask
            pl.BlockSpec((1, S, Dp), lambda b, pr: (b, 0, pr)),               # Q pair
            pl.BlockSpec((1, S, Dp), lambda b, pr: (b, 0, npair + pr)),       # K pair
            pl.BlockSpec((1, S, Dp), lambda b, pr: (b, 0, 2 * npair + pr)),   # V pair
        ],
        out_specs=pl.BlockSpec((1, S, Dp), lambda b, pr: (b, 0, pr)),
        compiler_params=_cparams(("parallel", "parallel")),
    )(mask_b1s, qkv, qkv, qkv)
    return ctx


def transformer_layer(x, mask_b1s, p, prefix, num_heads):
    # post-LN block (shared structure of DistilBERT / BERT layers)
    ctx = multi_head_attention(x, mask_b1s, p, f"{prefix}_attn", num_heads)
    # attention output projection + residual + LayerNorm (fused, resident weight)
    x = linear_ln(ctx, p[f"{prefix}_attn_wo"], p[f"{prefix}_attn_bo"],
                  p[f"{prefix}_ln1_g"], p[f"{prefix}_ln1_b"], residual=x)
    # FFN1 + GELU (fused), then FFN2 + residual + LayerNorm (fused)
    h = linear(x, p[f"{prefix}_ffn_w1"], p[f"{prefix}_ffn_b1"], gelu=True)
    x = linear_ln(h, p[f"{prefix}_ffn_w2"], p[f"{prefix}_ffn_b2"],
                  p[f"{prefix}_ln2_g"], p[f"{prefix}_ln2_b"], residual=x)
    return x


def distilbert_encoder(input_ids, mask_b1s, p, cfg):
    B, S = input_ids.shape
    H = cfg["hidden"]
    # embedding id gather kept in plain JAX (glue)
    word = jnp.take(p["enc_word_emb"], input_ids, axis=0)          # (B, S, H) f32
    pos = p["enc_pos_emb"][:S]                                     # (S, H)
    x = pl.pallas_call(
        _enc_embed_kernel,
        out_shape=jax.ShapeDtypeStruct((B, S, H), jnp.bfloat16),
        grid=(B,),
        in_specs=[
            pl.BlockSpec((1, S, H), lambda bi: (bi, 0, 0)),
            pl.BlockSpec((S, H), lambda bi: (0, 0)),
            pl.BlockSpec((1, H), lambda bi: (0, 0)),
            pl.BlockSpec((1, H), lambda bi: (0, 0)),
        ],
        out_specs=pl.BlockSpec((1, S, H), lambda bi: (bi, 0, 0)),
        compiler_params=_cparams(("parallel",)),
    )(word, pos, p["enc_emb_ln_g"].reshape(1, -1), p["enc_emb_ln_b"].reshape(1, -1))
    for l in range(cfg["enc_layers"]):
        x = transformer_layer(x, mask_b1s, p, f"enc_l{l}", cfg["num_heads"])
    return x


def bert_decoder(dec_embedded, mask_b1s, p, cfg):
    x = dec_embedded
    for l in range(cfg["dec_layers"]):
        x = transformer_layer(x, mask_b1s, p, f"dec_l{l}", cfg["num_heads"])
    # LM prediction head: dense + GELU + LayerNorm (fused) + vocab projection
    h = linear_ln(x, p["lm_transform_w"], p["lm_transform_b"],
                  p["lm_ln_g"], p["lm_ln_b"], gelu=True)
    # vocab projection: lane-padded vocab, wide tn tiles, f32 logits; slice pad off
    logits = linear(h, p["lm_decoder_w"], p["lm_decoder_b"],
                    out_dtype=jnp.float32, tn_target=2048)
    return logits[..., :cfg["vocab"]]


def bert_vae_forward(params, inputs, eps, cfg):
    input_ids = inputs["input_ids"]
    B, S = input_ids.shape
    H, L = cfg["hidden"], cfg["latent_dim"]
    mask_b1s = inputs["attention_mask"].astype(jnp.float32).reshape(B, 1, S)

    enc_output = distilbert_encoder(input_ids, mask_b1s, params, cfg)   # bf16

    # VAE bottleneck (tiny: single-block kernel, f32)
    cls_tokens = enc_output[:, 0, :]
    bottleneck_args = (cls_tokens,
                       params["mu_w"], params["mu_b"].reshape(1, -1),
                       params["rho_w"], params["rho_b"].reshape(1, -1),
                       eps,
                       params["dist_w"], params["dist_b"].reshape(1, -1))
    out_shapes = [(B, L), (B, L), (B, H)]
    z_mu, z_rho, dist_row = pl.pallas_call(
        _vae_bottleneck_kernel,
        out_shape=[jax.ShapeDtypeStruct(s, jnp.float32) for s in out_shapes],
        in_specs=[_full_spec(a.shape) for a in bottleneck_args],
        out_specs=[_full_spec(s) for s in out_shapes],
        compiler_params=_cparams(),
    )(*bottleneck_args)

    # fused: assemble dec_input (row-0 <- distributor(z)), subtract encoder pos
    # embeddings, add decoder pos + token-type embeddings, single LayerNorm
    dec_embedded = pl.pallas_call(
        _dec_embed_kernel,
        out_shape=jax.ShapeDtypeStruct((B, S, H), jnp.bfloat16),
        grid=(B,),
        in_specs=[
            pl.BlockSpec((1, S, H), lambda bi: (bi, 0, 0)),
            pl.BlockSpec((1, 1, H), lambda bi: (bi, 0, 0)),
            pl.BlockSpec((S, H), lambda bi: (0, 0)),
            pl.BlockSpec((S, H), lambda bi: (0, 0)),
            pl.BlockSpec((1, H), lambda bi: (0, 0)),
            pl.BlockSpec((1, H), lambda bi: (0, 0)),
            pl.BlockSpec((1, H), lambda bi: (0, 0)),
        ],
        out_specs=pl.BlockSpec((1, S, H), lambda bi: (bi, 0, 0)),
        compiler_params=_cparams(("parallel",)),
    )(enc_output, dist_row.reshape(B, 1, H),
      params["enc_pos_emb"][:S], params["dec_pos_emb"][:S],
      params["dec_type_emb"][0].reshape(1, -1),
      params["dec_emb_ln_g"].reshape(1, -1), params["dec_emb_ln_b"].reshape(1, -1))

    logits = bert_decoder(dec_embedded, mask_b1s, params, cfg)
    return z_mu, z_rho, logits


# --------------------------- deterministic params --------------------------

def init_params(key, cfg):
    H, L, V = cfg["hidden"], cfg["latent_dim"], cfg["vocab"]
    Ff, Pmax = cfg["ffn"], cfg["max_pos"]
    Dh = H // cfg["num_heads"]
    V_pad = ((V + 127) // 128) * 128          # lane-pad vocab projection
    p = {}
    counter = [0]
    bf16 = jnp.bfloat16

    def nrm(shape, dtype=jnp.float32, scale=0.02):
        counter[0] += 1
        w = scale * jax.random.normal(jax.random.fold_in(key, counter[0]),
                                      shape, jnp.float32)
        return w.astype(dtype)

    def zeros(shape):
        return jnp.zeros(shape, jnp.float32)

    def ones(shape):
        return jnp.ones(shape, jnp.float32)

    p["enc_word_emb"] = nrm((V, H))
    p["enc_pos_emb"] = nrm((Pmax, H))
    p["enc_emb_ln_g"], p["enc_emb_ln_b"] = ones((H,)), zeros((H,))

    def add_layer(prefix):
        # matmul weights stored bf16 (MXU throughput / HBM traffic);
        # biases & LayerNorm params stay f32.
        # 1/sqrt(Dh) softmax scale is baked into the Q columns of the fused QKV
        # weight (the fused bias is zero, so no bias scaling is needed).
        wqkv = nrm((H, 3 * H), jnp.float32)
        qscale = jnp.concatenate([jnp.full((H,), Dh ** -0.5, jnp.float32),
                                  jnp.ones((2 * H,), jnp.float32)])
        p[f"{prefix}_attn_wqkv"] = (wqkv * qscale[None, :]).astype(bf16)
        p[f"{prefix}_attn_bqkv"] = zeros((3 * H,))
        p[f"{prefix}_attn_wo"] = nrm((H, H), bf16)
        p[f"{prefix}_attn_bo"] = zeros((H,))
        p[f"{prefix}_ln1_g"], p[f"{prefix}_ln1_b"] = ones((H,)), zeros((H,))
        p[f"{prefix}_ffn_w1"], p[f"{prefix}_ffn_b1"] = nrm((H, Ff), bf16), zeros((Ff,))
        p[f"{prefix}_ffn_w2"], p[f"{prefix}_ffn_b2"] = nrm((Ff, H), bf16), zeros((H,))
        p[f"{prefix}_ln2_g"], p[f"{prefix}_ln2_b"] = ones((H,)), zeros((H,))

    for l in range(cfg["enc_layers"]):
        add_layer(f"enc_l{l}")

    # VAE bottleneck kept f32 (tiny, precision-sensitive latent path)
    p["mu_w"], p["mu_b"] = nrm((H, L)), zeros((L,))
    p["rho_w"], p["rho_b"] = nrm((H, L)), zeros((L,))
    p["dist_w"], p["dist_b"] = nrm((L, H)), zeros((H,))

    p["dec_pos_emb"] = nrm((Pmax, H))
    p["dec_type_emb"] = nrm((2, H))
    p["dec_emb_ln_g"], p["dec_emb_ln_b"] = ones((H,)), zeros((H,))
    for l in range(cfg["dec_layers"]):
        add_layer(f"dec_l{l}")

    p["lm_transform_w"], p["lm_transform_b"] = nrm((H, H), bf16), zeros((H,))
    p["lm_ln_g"], p["lm_ln_b"] = ones((H,)), zeros((H,))
    p["lm_decoder_w"] = nrm((H, V_pad), bf16)     # padded cols are sliced off
    p["lm_decoder_b"] = zeros((V_pad,))
    return p


# ---------------------------------- main -----------------------------------

if __name__ == "__main__":
    # TODO(synk): original module loads pretrained HF 6/12-layer checkpoints;
    # here we use synthetic 1-layer mini-BERTs with identical forward structure.
    # hidden=128 / num_heads=2 keeps each attention head *pair* exactly 128
    # lanes wide, matching the real BERT head_dim=64 layout the kernel targets.
    cfg = dict(hidden=128, latent_dim=32, vocab=64, ffn=256, max_pos=16,
               num_heads=2, enc_layers=1, dec_layers=1)

    key = jax.random.PRNGKey(0)
    pkey, ikey, ekey = jax.random.split(key, 3)

    params = init_params(pkey, cfg)

    B, S = 2, 8
    input_ids = jax.random.randint(ikey, (B, S), 0, cfg["vocab"], dtype=jnp.int32)
    attention_mask = jnp.array(
        [[1] * S, [1] * (S - 2) + [0, 0]], dtype=jnp.int32)  # second seq padded
    # epsilon ~ N(0, 1), drawn once (matches torch.normal in the forward)
    eps = jax.random.normal(ekey, (B, cfg["latent_dim"]), jnp.float32)

    inputs = {"input_ids": input_ids, "attention_mask": attention_mask}

    fwd = jax.jit(lambda prm, inp, e: bert_vae_forward(prm, inp, e, cfg))
    z_mu, z_rho, logits = fwd(params, inputs, eps)
    jax.block_until_ready((z_mu, z_rho, logits))

    assert z_mu.shape == (B, cfg["latent_dim"])
    assert z_rho.shape == (B, cfg["latent_dim"])
    assert logits.shape == (B, S, cfg["vocab"])
    assert logits.dtype == jnp.float32
    assert bool(jnp.all(jnp.isfinite(logits)))
    print("KERNEL_OK")
</pallas_src>

<mosaic_0001>
module attributes {stable_mosaic.version = 11 : i64} {
  func.func @_enc_embed_kernel(%arg0: i32, %arg1: memref<1x8x128xf32, #tpu.memory_space<vmem>>, %arg2: memref<8x128xf32, #tpu.memory_space<vmem>>, %arg3: memref<1x128xf32, #tpu.memory_space<vmem>>, %arg4: memref<1x128xf32, #tpu.memory_space<vmem>>, %arg5: memref<1x8x128xbf16, #tpu.memory_space<vmem>>) attributes {dimension_semantics = [#tpu.dimension_semantics<parallel>], iteration_bounds = array<i64: 2>, scalar_prefetch = 0 : i64, scratch_operands = 0 : i64, tpu.core_type = #tpu.core_type<tc>, window_params = [{transform_indices = @transform_0, window_bounds = array<i64: 1, 8, 128>}, {pipeline_mode = #tpu.pipeline_mode<synchronous>, transform_indices = @transform_1, window_bounds = array<i64: 8, 128>}, {pipeline_mode = #tpu.pipeline_mode<synchronous>, transform_indices = @transform_2, window_bounds = array<i64: 1, 128>}, {pipeline_mode = #tpu.pipeline_mode<synchronous>, transform_indices = @transform_3, window_bounds = array<i64: 1, 128>}, {transform_indices = @transform_4, window_bounds = array<i64: 1, 8, 128>}]} {
    %c0 = arith.constant 0 : index
    %c0_0 = arith.constant 0 : index
    %c0_1 = arith.constant 0 : index
    %0 = vector.load %arg1[%c0, %c0_0, %c0_1] : memref<1x8x128xf32, #tpu.memory_space<vmem>>, vector<1x8x128xf32>
    %1 = vector.shape_cast %0 : vector<1x8x128xf32> to vector<8x128xf32>
    %c0_2 = arith.constant 0 : index
    %c0_3 = arith.constant 0 : index
    %2 = vector.load %arg2[%c0_2, %c0_3] : memref<8x128xf32, #tpu.memory_space<vmem>>, vector<8x128xf32>
    %3 = arith.addf %1, %2 : vector<8x128xf32>
    %cst = arith.constant dense<0.000000e+00> : vector<8xf32>
    %4 = vector.multi_reduction <add>, %3, %cst [1] : vector<8x128xf32> to vector<8xf32>
    %5 = vector.shape_cast %4 : vector<8xf32> to vector<8x1xf32>
    %cst_4 = arith.constant 1.280000e+02 : f32
    %6 = vector.broadcast %cst_4 : f32 to vector<8x1xf32>
    %7 = arith.divf %5, %6 : vector<8x1xf32>
    %8 = vector.broadcast %7 : vector<8x1xf32> to vector<8x128xf32>
    %9 = arith.subf %3, %8 : vector<8x128xf32>
    %10 = arith.mulf %9, %9 : vector<8x128xf32>
    %cst_5 = arith.constant dense<0.000000e+00> : vector<8xf32>
    %11 = vector.multi_reduction <add>, %10, %cst_5 [1] : vector<8x128xf32> to vector<8xf32>
    %12 = vector.shape_cast %11 : vector<8xf32> to vector<8x1xf32>
    %cst_6 = arith.constant 1.280000e+02 : f32
    %13 = vector.broadcast %cst_6 : f32 to vector<8x1xf32>
    %14 = arith.divf %12, %13 : vector<8x1xf32>
    %15 = vector.broadcast %7 : vector<8x1xf32> to vector<8x128xf32>
    %16 = arith.subf %3, %15 : vector<8x128xf32>
    %cst_7 = arith.constant 9.99999996E-13 : f32
    %17 = vector.broadcast %cst_7 : f32 to vector<8x1xf32>
    %18 = arith.addf %14, %17 : vector<8x1xf32>
    %19 = math.rsqrt %18 : vector<8x1xf32>
    %20 = vector.broadcast %19 : vector<8x1xf32> to vector<8x128xf32>
    %21 = arith.mulf %16, %20 : vector<8x128xf32>
    %c0_8 = arith.constant 0 : index
    %c0_9 = arith.constant 0 : index
    %22 = vector.load %arg3[%c0_8, %c0_9] : memref<1x128xf32, #tpu.memory_space<vmem>>, vector<1x128xf32>
    %23 = vector.broadcast %22 : vector<1x128xf32> to vector<8x128xf32>
    %24 = arith.mulf %21, %23 : vector<8x128xf32>
    %c0_10 = arith.constant 0 : index
    %c0_11 = arith.constant 0 : index
    %25 = vector.load %arg4[%c0_10, %c0_11] : memref<1x128xf32, #tpu.memory_space<vmem>>, vector<1x128xf32>
    %26 = vector.broadcast %25 : vector<1x128xf32> to vector<8x128xf32>
    %27 = arith.addf %24, %26 : vector<8x128xf32>
    %28 = arith.truncf %27 : vector<8x128xf32> to vector<8x128xbf16>
    %c0_12 = arith.constant 0 : index
    %c0_13 = arith.constant 0 : index
    %c0_14 = arith.constant 0 : index
    %29 = vector.load %arg5[%c0_12, %c0_13, %c0_14] : memref<1x8x128xbf16, #tpu.memory_space<vmem>>, vector<1x8x128xbf16>
    %30 = vector.shape_cast %29 : vector<1x8x128xbf16> to vector<8x128xbf16>
    %31 = vector.shape_cast %28 : vector<8x128xbf16> to vector<1x8x128xbf16>
    tpu.vector_store %arg5[%c0_12, %c0_13, %c0_14], %31 {strides = array<i32>} : memref<1x8x128xbf16, #tpu.memory_space<vmem>>, vector<1x8x128xbf16>,
    return
  }
  func.func @transform_0(%arg0: i32) -> (i32, i32, i32) {
    %c0_i32 = arith.constant 0 : i32
    %c0_i32_0 = arith.constant 0 : i32
    %c0_i32_1 = arith.constant 0 : i32
    return %arg0, %c0_i32, %c0_i32_0 : i32, i32, i32
  }
  func.func @transform_1(%arg0: i32) -> (i32, i32) {
    %c0_i32 = arith.constant 0 : i32
    %c0_i32_0 = arith.constant 0 : i32
    %c0_i32_1 = arith.constant 0 : i32
    return %c0_i32, %c0_i32_0 : i32, i32
  }
  func.func @transform_2(%arg0: i32) -> (i32, i32) {
    %c0_i32 = arith.constant 0 : i32
    %c0_i32_0 = arith.constant 0 : i32
    %c0_i32_1 = arith.constant 0 : i32
    return %c0_i32, %c0_i32_0 : i32, i32
  }
  func.func @transform_3(%arg0: i32) -> (i32, i32) {
    %c0_i32 = arith.constant 0 : i32
    %c0_i32_0 = arith.constant 0 : i32
    %c0_i32_1 = arith.constant 0 : i32
    return %c0_i32, %c0_i32_0 : i32, i32
  }
  func.func @transform_4(%arg0: i32) -> (i32, i32, i32) {
    %c0_i32 = arith.constant 0 : i32
    %c0_i32_0 = arith.constant 0 : i32
    %c0_i32_1 = arith.constant 0 : i32
    return %arg0, %c0_i32, %c0_i32_0 : i32, i32, i32
  }
}

module attributes {stable_mosaic.version = 11 : i64} {
  func.func @kernel(%arg0: i32, %arg1: i32, %arg2: i32, %arg3: memref<16x128xbf16, #tpu.memory_space<vmem>>, %arg4: memref<128x384xbf16, #tpu.memory_space<vmem>>, %arg5: memref<1x384xf32, #tpu.memory_space<vmem>>, %arg6: memref<16x384xbf16, #tpu.memory_space<vmem>>, %arg7: memref<16x384xf32, #tpu.memory_space<vmem>>) attributes {dimension_semantics = [#tpu.dimension_semantics<parallel>, #tpu.dimension_semantics<parallel>, #tpu.dimension_semantics<arbitrary>], iteration_bounds = array<i64: 1, 1, 1>, scalar_prefetch = 0 : i64, scratch_operands = 1 : i64, tpu.core_type = #tpu.core_type<tc>, window_params = [{transform_indices = @transform_0, window_bounds = array<i64: 16, 128>}, {transform_indices = @transform_1, window_bounds = array<i64: 128, 384>}, {transform_indices = @transform_2, window_bounds = array<i64: 1, 384>}, {transform_indices = @transform_3, window_bounds = array<i64: 16, 384>}]} {
    %c0_i32 = arith.constant 0 : i32
    %0 = arith.cmpi eq, %arg2, %c0_i32 : i32
    %1 = arith.extui %0 : i1 to i32
    %c0_i32_0 = arith.constant 0 : i32
    %2 = arith.cmpi ne, %1, %c0_i32_0 : i32
    scf.if %2 {
      %cst_10 = arith.constant 0.000000e+00 : f32
      %12 = vector.broadcast %cst_10 : f32 to vector<16x384xf32>
      %c0_11 = arith.constant 0 : index
      %c0_12 = arith.constant 0 : index
      %13 = vector.load %arg7[%c0_11, %c0_12] : memref<16x384xf32, #tpu.memory_space<vmem>>, vector<16x384xf32>
      tpu.vector_store %arg7[%c0_11, %c0_12], %12 {strides = array<i32>} : memref<16x384xf32, #tpu.memory_space<vmem>>, vector<16x384xf32>,
    } else {
    }
    %c0 = arith.constant 0 : index
    %c0_1 = arith.constant 0 : index
    %3 = vector.load %arg7[%c0, %c0_1] : memref<16x384xf32, #tpu.memory_space<vmem>>, vector<16x384xf32>
    %c0_2 = arith.constant 0 : index
    %c0_3 = arith.constant 0 : index
    %4 = vector.load %arg3[%c0_2, %c0_3] : memref<16x128xbf16, #tpu.memory_space<vmem>>, vector<16x128xbf16>
    %c0_4 = arith.constant 0 : index
    %c0_5 = arith.constant 0 : index
    %5 = vector.load %arg4[%c0_4, %c0_5] : memref<128x384xbf16, #tpu.memory_space<vmem>>, vector<128x384xbf16>
    %cst = arith.constant dense<0.000000e+00> : vector<16x384xf32>
    %6 = tpu.matmul %4, %5, %cst {dimension_numbers = #tpu.dot_dimension_numbers<[1], [0], [0], [1], [0, 0, 1, 1], [], []>} : vector<16x128xbf16>, vector<128x384xbf16>, vector<16x384xf32> -> vector<16x384xf32>
    %7 = arith.addf %3, %6 : vector<16x384xf32>
    %c0_6 = arith.constant 0 : index
    %c0_7 = arith.constant 0 : index
    %8 = vector.load %arg7[%c0_6, %c0_7] : memref<16x384xf32, #tpu.memory_space<vmem>>, vector<16x384xf32>
    tpu.vector_store %arg7[%c0_6, %c0_7], %7 {strides = array<i32>} : memref<16x384xf32, #tpu.memory_space<vmem>>, vector<16x384xf32>,
    %c0_i32_8 = arith.constant 0 : i32
    %9 = arith.cmpi eq, %arg2, %c0_i32_8 : i32
    %10 = arith.extui %9 : i1 to i32
    %c0_i32_9 = arith.constant 0 : i32
    %11 = arith.cmpi ne, %10, %c0_i32_9 : i32
    scf.if %11 {
      %c0_10 = arith.constant 0 : index
      %c0_11 = arith.constant 0 : index
      %12 = vector.load %arg7[%c0_10, %c0_11] : memref<16x384xf32, #tpu.memory_space<vmem>>, vector<16x384xf32>
      %c0_12 = arith.constant 0 : index
      %c0_13 = arith.constant 0 : index
      %13 = vector.load %arg5[%c0_12, %c0_13] : memref<1x384xf32, #tpu.memory_space<vmem>>, vector<1x384xf32>
      %14 = vector.broadcast %13 : vector<1x384xf32> to vector<16x384xf32>
      %15 = arith.addf %12, %14 : vector<16x384xf32>
      %16 = arith.truncf %15 : vector<16x384xf32> to vector<16x384xbf16>
      %c0_14 = arith.constant 0 : index
      %c0_15 = arith.constant 0 : index
      %17 = vector.load %arg6[%c0_14, %c0_15] : memref<16x384xbf16, #tpu.memory_space<vmem>>, vector<16x384xbf16>
      tpu.vector_store %arg6[%c0_14, %c0_15], %16 {strides = array<i32>} : memref<16x384xbf16, #tpu.memory_space<vmem>>, vector<16x384xbf16>,
    } else {
    }
    return
  }
  func.func @transform_0(%arg0: i32, %arg1: i32, %arg2: i32) -> (i32, i32) {
    %c0_i32 = arith.constant 0 : i32
    return %arg0, %arg2 : i32, i32
  }
  func.func @transform_1(%arg0: i32, %arg1: i32, %arg2: i32) -> (i32, i32) {
    %c0_i32 = arith.constant 0 : i32
    return %arg2, %arg1 : i32, i32
  }
  func.func @transform_2(%arg0: i32, %arg1: i32, %arg2: i32) -> (i32, i32) {
    %c0_i32 = arith.constant 0 : i32
    %c0_i32_0 = arith.constant 0 : i32
    return %c0_i32, %arg1 : i32, i32
  }
  func.func @transform_3(%arg0: i32, %arg1: i32, %arg2: i32) -> (i32, i32) {
    %c0_i32 = arith.constant 0 : i32
    return %arg0, %arg1 : i32, i32
  }
}

module attributes {stable_mosaic.version = 11 : i64} {
  func.func @kernel(%arg0: i32, %arg1: i32, %arg2: memref<1x1x8xf32, #tpu.memory_space<vmem>>, %arg3: memref<1x8x128xbf16, #tpu.memory_space<vmem>>, %arg4: memref<1x8x128xbf16, #tpu.memory_space<vmem>>, %arg5: memref<1x8x128xbf16, #tpu.memory_space<vmem>>, %arg6: memref<1x8x128xbf16, #tpu.memory_space<vmem>>) attributes {dimension_semantics = [#tpu.dimension_semantics<parallel>, #tpu.dimension_semantics<parallel>], iteration_bounds = array<i64: 2, 1>, scalar_prefetch = 0 : i64, scratch_operands = 0 : i64, tpu.core_type = #tpu.core_type<tc>, window_params = [{transform_indices = @transform_0, window_bounds = array<i64: 1, 1, 8>}, {transform_indices = @transform_1, window_bounds = array<i64: 1, 8, 128>}, {transform_indices = @transform_2, window_bounds = array<i64: 1, 8, 128>}, {transform_indices = @transform_3, window_bounds = array<i64: 1, 8, 128>}, {transform_indices = @transform_4, window_bounds = array<i64: 1, 8, 128>}]} {
    %c0 = arith.constant 0 : index
    %c0_0 = arith.constant 0 : index
    %c0_1 = arith.constant 0 : index
    %0 = vector.load %arg2[%c0, %c0_0, %c0_1] : memref<1x1x8xf32, #tpu.memory_space<vmem>>, vector<1x1x8xf32>
    %1 = vector.shape_cast %0 : vector<1x1x8xf32> to vector<1x8xf32>
    %cst = arith.constant 1.000000e+00 : f32
    %2 = vector.broadcast %cst : f32 to vector<1x8xf32>
    %3 = arith.subf %2, %1 : vector<1x8xf32>
    %cst_2 = arith.constant -1.000000e+09 : f32
    %4 = vector.broadcast %cst_2 : f32 to vector<1x8xf32>
    %5 = arith.mulf %3, %4 : vector<1x8xf32>
    %c0_3 = arith.constant 0 : index
    %c0_4 = arith.constant 0 : index
    %c0_5 = arith.constant 0 : index
    %6 = vector.load %arg3[%c0_3, %c0_4, %c0_5] : memref<1x8x128xbf16, #tpu.memory_space<vmem>>, vector<1x8x128xbf16>
    %7 = vector.shape_cast %6 : vector<1x8x128xbf16> to vector<8x128xbf16>
    %c0_6 = arith.constant 0 : index
    %c0_7 = arith.constant 0 : index
    %c0_8 = arith.constant 0 : index
    %8 = vector.load %arg4[%c0_6, %c0_7, %c0_8] : memref<1x8x128xbf16, #tpu.memory_space<vmem>>, vector<1x8x128xbf16>
    %9 = vector.shape_cast %8 : vector<1x8x128xbf16> to vector<8x128xbf16>
    %c0_9 = arith.constant 0 : index
    %c0_10 = arith.constant 0 : index
    %c0_11 = arith.constant 0 : index
    %10 = vector.load %arg5[%c0_9, %c0_10, %c0_11] : memref<1x8x128xbf16, #tpu.memory_space<vmem>>, vector<1x8x128xbf16>
    %11 = vector.shape_cast %10 : vector<1x8x128xbf16> to vector<8x128xbf16>
    %12 = vector.extract_strided_slice %7 {offsets = [0, 0], sizes = [8, 64], strides = [1, 1]} : vector<8x128xbf16> to vector<8x64xbf16>
    %13 = vector.extract_strided_slice %9 {offsets = [0, 0], sizes = [8, 64], strides = [1, 1]} : vector<8x128xbf16> to vector<8x64xbf16>
    %cst_12 = arith.constant dense<0.000000e+00> : vector<8x8xf32>
    %14 = tpu.matmul %12, %13, %cst_12 {dimension_numbers = #tpu.dot_dimension_numbers<[1], [1], [0], [0], [0, 0, 1, 0], [], []>} : vector<8x64xbf16>, vector<8x64xbf16>, vector<8x8xf32> -> vector<8x8xf32>
    %15 = vector.broadcast %5 : vector<1x8xf32> to vector<8x8xf32>
    %16 = arith.addf %14, %15 : vector<8x8xf32>
    %cst_13 = arith.constant dense<0xFF800000> : vector<8xf32>
    %17 = vector.multi_reduction <maximumf>, %16, %cst_13 [1] : vector<8x8xf32> to vector<8xf32>
    %18 = vector.shape_cast %17 : vector<8xf32> to vector<8x1xf32>
    %19 = vector.broadcast %18 : vector<8x1xf32> to vector<8x8xf32>
    %20 = arith.subf %16, %19 : vector<8x8xf32>
    %21 = math.exp %20 : vector<8x8xf32>
    %cst_14 = arith.constant dense<0.000000e+00> : vector<8xf32>
    %22 = vector.multi_reduction <add>, %21, %cst_14 [1] : vector<8x8xf32> to vector<8xf32>
    %23 = vector.shape_cast %22 : vector<8xf32> to vector<8x1xf32>
    %24 = tpu.reciprocal %23 {approx = true} : vector<8x1xf32> -> vector<8x1xf32>
    %25 = vector.broadcast %24 : vector<8x1xf32> to vector<8x8xf32>
    %26 = arith.mulf %21, %25 : vector<8x8xf32>
    %27 = arith.truncf %26 : vector<8x8xf32> to vector<8x8xbf16>
    %28 = vector.extract_strided_slice %11 {offsets = [0, 0], sizes = [8, 64], strides = [1, 1]} : vector<8x128xbf16> to vector<8x64xbf16>
    %cst_15 = arith.constant dense<0.000000e+00> : vector<8x64xf32>
    %29 = tpu.matmul %27, %28, %cst_15 {dimension_numbers = #tpu.dot_dimension_numbers<[1], [0], [0], [1], [0, 0, 1, 1], [], []>} : vector<8x8xbf16>, vector<8x64xbf16>, vector<8x64xf32> -> vector<8x64xf32>
    %30 = vector.extract_strided_slice %7 {offsets = [0, 64], sizes = [8, 64], strides = [1, 1]} : vector<8x128xbf16> to vector<8x64xbf16>
    %31 = vector.extract_strided_slice %9 {offsets = [0, 64], sizes = [8, 64], strides = [1, 1]} : vector<8x128xbf16> to vector<8x64xbf16>
    %cst_16 = arith.constant dense<0.000000e+00> : vector<8x8xf32>
    %32 = tpu.matmul %30, %31, %cst_16 {dimension_numbers = #tpu.dot_dimension_numbers<[1], [1], [0], [0], [0, 0, 1, 0], [], []>} : vector<8x64xbf16>, vector<8x64xbf16>, vector<8x8xf32> -> vector<8x8xf32>
    %33 = vector.broadcast %5 : vector<1x8xf32> to vector<8x8xf32>
    %34 = arith.addf %32, %33 : vector<8x8xf32>
    %cst_17 = arith.constant dense<0xFF800000> : vector<8xf32>
    %35 = vector.multi_reduction <maximumf>, %34, %cst_17 [1] : vector<8x8xf32> to vector<8xf32>
    %36 = vector.shape_cast %35 : vector<8xf32> to vector<8x1xf32>
    %37 = vector.broadcast %36 : vector<8x1xf32> to vector<8x8xf32>
    %38 = arith.subf %34, %37 : vector<8x8xf32>
    %39 = math.exp %38 : vector<8x8xf32>
    %cst_18 = arith.constant dense<0.000000e+00> : vector<8xf32>
    %40 = vector.multi_reduction <add>, %39, %cst_18 [1] : vector<8x8xf32> to vector<8xf32>
    %41 = vector.shape_cast %40 : vector<8xf32> to vector<8x1xf32>
    %42 = tpu.reciprocal %41 {approx = true} : vector<8x1xf32> -> vector<8x1xf32>
    %43 = vector.broadcast %42 : vector<8x1xf32> to vector<8x8xf32>
    %44 = arith.mulf %39, %43 : vector<8x8xf32>
    %45 = arith.truncf %44 : vector<8x8xf32> to vector<8x8xbf16>
    %46 = vector.extract_strided_slice %11 {offsets = [0, 64], sizes = [8, 64], strides = [1, 1]} : vector<8x128xbf16> to vector<8x64xbf16>
    %cst_19 = arith.constant dense<0.000000e+00> : vector<8x64xf32>
    %47 = tpu.matmul %45, %46, %cst_19 {dimension_numbers = #tpu.dot_dimension_numbers<[1], [0], [0], [1], [0, 0, 1, 1], [], []>} : vector<8x8xbf16>, vector<8x64xbf16>, vector<8x64xf32> -> vector<8x64xf32>
    %48 = tpu.concatenate %29, %47 in 1 : vector<8x64xf32>, vector<8x64xf32> -> vector<8x128xf32>
    %49 = arith.truncf %48 : vector<8x128xf32> to vector<8x128xbf16>
    %c0_20 = arith.constant 0 : index
    %c0_21 = arith.constant 0 : index
    %c0_22 = arith.constant 0 : index
    %50 = vector.load %arg6[%c0_20, %c0_21, %c0_22] : memref<1x8x128xbf16, #tpu.memory_space<vmem>>, vector<1x8x128xbf16>
    %51 = vector.shape_cast %50 : vector<1x8x128xbf16> to vector<8x128xbf16>
    %52 = vector.shape_cast %49 : vector<8x128xbf16> to vector<1x8x128xbf16>
    tpu.vector_store %arg6[%c0_20, %c0_21, %c0_22], %52 {strides = array<i32>} : memref<1x8x128xbf16, #tpu.memory_space<vmem>>, vector<1x8x128xbf16>,
    return
  }
  func.func @transform_0(%arg0: i32, %arg1: i32) -> (i32, i32, i32) {
    %c0_i32 = arith.constant 0 : i32
    %c0_i32_0 = arith.constant 0 : i32
    %c0_i32_1 = arith.constant 0 : i32
    return %arg0, %c0_i32, %c0_i32_0 : i32, i32, i32
  }
  func.func @transform_1(%arg0: i32, %arg1: i32) -> (i32, i32, i32) {
    %c0_i32 = arith.constant 0 : i32
    %c0_i32_0 = arith.constant 0 : i32
    return %arg0, %c0_i32, %arg1 : i32, i32, i32
  }
  func.func @transform_2(%arg0: i32, %arg1: i32) -> (i32, i32, i32) {
    %c1_i32 = arith.constant 1 : i32
    %0 = arith.addi %c1_i32, %arg1 : i32
    %c0_i32 = arith.constant 0 : i32
    %c0_i32_0 = arith.constant 0 : i32
    return %arg0, %c0_i32, %0 : i32, i32, i32
  }
  func.func @transform_3(%arg0: i32, %arg1: i32) -> (i32, i32, i32) {
    %c2_i32 = arith.constant 2 : i32
    %0 = arith.addi %c2_i32, %arg1 : i32
    %c0_i32 = arith.constant 0 : i32
    %c0_i32_0 = arith.constant 0 : i32
    return %arg0, %c0_i32, %0 : i32, i32, i32
  }
  func.func @transform_4(%arg0: i32, %arg1: i32) -> (i32, i32, i32) {
    %c0_i32 = arith.constant 0 : i32
    %c0_i32_0 = arith.constant 0 : i32
    return %arg0, %c0_i32, %arg1 : i32, i32, i32
  }
}

module attributes {stable_mosaic.version = 11 : i64} {
  func.func @kernel(%arg0: i32, %arg1: memref<16x128xbf16, #tpu.memory_space<vmem>>, %arg2: memref<128x128xbf16, #tpu.memory_space<vmem>>, %arg3: memref<1x128xf32, #tpu.memory_space<vmem>>, %arg4: memref<16x128xbf16, #tpu.memory_space<vmem>>, %arg5: memref<1x128xf32, #tpu.memory_space<vmem>>, %arg6: memref<1x128xf32, #tpu.memory_space<vmem>>, %arg7: memref<16x128xbf16, #tpu.memory_space<vmem>>) attributes {dimension_semantics = [#tpu.dimension_semantics<parallel>], iteration_bounds = array<i64: 1>, scalar_prefetch = 0 : i64, scratch_operands = 0 : i64, tpu.core_type = #tpu.core_type<tc>, window_params = [{transform_indices = @transform_0, window_bounds = array<i64: 16, 128>}, {pipeline_mode = #tpu.pipeline_mode<synchronous>, transform_indices = @transform_1, window_bounds = array<i64: 128, 128>}, {pipeline_mode = #tpu.pipeline_mode<synchronous>, transform_indices = @transform_2, window_bounds = array<i64: 1, 128>}, {transform_indices = @transform_3, window_bounds = array<i64: 16, 128>}, {pipeline_mode = #tpu.pipeline_mode<synchronous>, transform_indices = @transform_4, window_bounds = array<i64: 1, 128>}, {pipeline_mode = #tpu.pipeline_mode<synchronous>, transform_indices = @transform_5, window_bounds = array<i64: 1, 128>}, {transform_indices = @transform_6, window_bounds = array<i64: 16, 128>}]} {
    %c0 = arith.constant 0 : index
    %c0_0 = arith.constant 0 : index
    %0 = vector.load %arg1[%c0, %c0_0] : memref<16x128xbf16, #tpu.memory_space<vmem>>, vector<16x128xbf16>
    %c0_1 = arith.constant 0 : index
    %c0_2 = arith.constant 0 : index
    %1 = vector.load %arg2[%c0_1, %c0_2] : memref<128x128xbf16, #tpu.memory_space<vmem>>, vector<128x128xbf16>
    %cst = arith.constant dense<0.000000e+00> : vector<16x128xf32>
    %2 = tpu.matmul %0, %1, %cst {dimension_numbers = #tpu.dot_dimension_numbers<[1], [0], [0], [1], [0, 0, 1, 1], [], []>} : vector<16x128xbf16>, vector<128x128xbf16>, vector<16x128xf32> -> vector<16x128xf32>
    %c0_3 = arith.constant 0 : index
    %c0_4 = arith.constant 0 : index
    %3 = vector.load %arg3[%c0_3, %c0_4] : memref<1x128xf32, #tpu.memory_space<vmem>>, vector<1x128xf32>
    %4 = vector.broadcast %3 : vector<1x128xf32> to vector<16x128xf32>
    %5 = arith.addf %2, %4 : vector<16x128xf32>
    %c0_5 = arith.constant 0 : index
    %c0_6 = arith.constant 0 : index
    %6 = vector.load %arg4[%c0_5, %c0_6] : memref<16x128xbf16, #tpu.memory_space<vmem>>, vector<16x128xbf16>
    %7 = arith.extf %6 : vector<16x128xbf16> to vector<16x128xf32>
    %8 = arith.addf %5, %7 : vector<16x128xf32>
    %cst_7 = arith.constant dense<0.000000e+00> : vector<16xf32>
    %9 = vector.multi_reduction <add>, %8, %cst_7 [1] : vector<16x128xf32> to vector<16xf32>
    %10 = vector.shape_cast %9 : vector<16xf32> to vector<16x1xf32>
    %cst_8 = arith.constant 1.280000e+02 : f32
    %11 = vector.broadcast %cst_8 : f32 to vector<16x1xf32>
    %12 = arith.divf %10, %11 : vector<16x1xf32>
    %13 = vector.broadcast %12 : vector<16x1xf32> to vector<16x128xf32>
    %14 = arith.subf %8, %13 : vector<16x128xf32>
    %15 = arith.mulf %14, %14 : vector<16x128xf32>
    %cst_9 = arith.constant dense<0.000000e+00> : vector<16xf32>
    %16 = vector.multi_reduction <add>, %15, %cst_9 [1] : vector<16x128xf32> to vector<16xf32>
    %17 = vector.shape_cast %16 : vector<16xf32> to vector<16x1xf32>
    %cst_10 = arith.constant 1.280000e+02 : f32
    %18 = vector.broadcast %cst_10 : f32 to vector<16x1xf32>
    %19 = arith.divf %17, %18 : vector<16x1xf32>
    %20 = vector.broadcast %12 : vector<16x1xf32> to vector<16x128xf32>
    %21 = arith.subf %8, %20 : vector<16x128xf32>
    %cst_11 = arith.constant 9.99999996E-13 : f32
    %22 = vector.broadcast %cst_11 : f32 to vector<16x1xf32>
    %23 = arith.addf %19, %22 : vector<16x1xf32>
    %24 = math.rsqrt %23 : vector<16x1xf32>
    %25 = vector.broadcast %24 : vector<16x1xf32> to vector<16x128xf32>
    %26 = arith.mulf %21, %25 : vector<16x128xf32>
    %c0_12 = arith.constant 0 : index
    %c0_13 = arith.constant 0 : index
    %27 = vector.load %arg5[%c0_12, %c0_13] : memref<1x128xf32, #tpu.memory_space<vmem>>, vector<1x128xf32>
    %28 = vector.broadcast %27 : vector<1x128xf32> to vector<16x128xf32>
    %29 = arith.mulf %26, %28 : vector<16x128xf32>
    %c0_14 = arith.constant 0 : index
    %c0_15 = arith.constant 0 : index
    %30 = vector.load %arg6[%c0_14, %c0_15] : memref<1x128xf32, #tpu.memory_space<vmem>>, vector<1x128xf32>
    %31 = vector.broadcast %30 : vector<1x128xf32> to vector<16x128xf32>
    %32 = arith.addf %29, %31 : vector<16x128xf32>
    %33 = arith.truncf %32 : vector<16x128xf32> to vector<16x128xbf16>
    %c0_16 = arith.constant 0 : index
    %c0_17 = arith.constant 0 : index
    %34 = vector.load %arg7[%c0_16, %c0_17] : memref<16x128xbf16, #tpu.memory_space<vmem>>, vector<16x128xbf16>
    tpu.vector_store %arg7[%c0_16, %c0_17], %33 {strides = array<i32>} : memref<16x128xbf16, #tpu.memory_space<vmem>>, vector<16x128xbf16>,
    return
  }
  func.func @transform_0(%arg0: i32) -> (i32, i32) {
    %c0_i32 = arith.constant 0 : i32
    %c0_i32_0 = arith.constant 0 : i32
    return %arg0, %c0_i32 : i32, i32
  }
  func.func @transform_1(%arg0: i32) -> (i32, i32) {
    %c0_i32 = arith.constant 0 : i32
    %c0_i32_0 = arith.constant 0 : i32
    %c0_i32_1 = arith.constant 0 : i32
    return %c0_i32, %c0_i32_0 : i32, i32
  }
  func.func @transform_2(%arg0: i32) -> (i32, i32) {
    %c0_i32 = arith.constant 0 : i32
    %c0_i32_0 = arith.constant 0 : i32
    %c0_i32_1 = arith.constant 0 : i32
    return %c0_i32, %c0_i32_0 : i32, i32
  }
  func.func @transform_3(%arg0: i32) -> (i32, i32) {
    %c0_i32 = arith.constant 0 : i32
    %c0_i32_0 = arith.constant 0 : i32
    return %arg0, %c0_i32 : i32, i32
  }
  func.func @transform_4(%arg0: i32) -> (i32, i32) {
    %c0_i32 = arith.constant 0 : i32
    %c0_i32_0 = arith.constant 0 : i32
    %c0_i32_1 = arith.constant 0 : i32
    return %c0_i32, %c0_i32_0 : i32, i32
  }
  func.func @transform_5(%arg0: i32) -> (i32, i32) {
    %c0_i32 = arith.constant 0 : i32
    %c0_i32_0 = arith.constant 0 : i32
    %c0_i32_1 = arith.constant 0 : i32
    return %c0_i32, %c0_i32_0 : i32, i32
  }
  func.func @transform_6(%arg0: i32) -> (i32, i32) {
    %c0_i32 = arith.constant 0 : i32
    %c0_i32_0 = arith.constant 0 : i32
    return %arg0, %c0_i32 : i32, i32
  }
}

module attributes {stable_mosaic.version = 11 : i64} {
  func.func @kernel(%arg0: i32, %arg1: memref<16x256xbf16, #tpu.memory_space<vmem>>, %arg2: memref<256x128xbf16, #tpu.memory_space<vmem>>, %arg3: memref<1x128xf32, #tpu.memory_space<vmem>>, %arg4: memref<16x128xbf16, #tpu.memory_space<vmem>>, %arg5: memref<1x128xf32, #tpu.memory_space<vmem>>, %arg6: memref<1x128xf32, #tpu.memory_space<vmem>>, %arg7: memref<16x128xbf16, #tpu.memory_space<vmem>>) attributes {dimension_semantics = [#tpu.dimension_semantics<parallel>], iteration_bounds = array<i64: 1>, scalar_prefetch = 0 : i64, scratch_operands = 0 : i64, tpu.core_type = #tpu.core_type<tc>, window_params = [{transform_indices = @transform_0, window_bounds = array<i64: 16, 256>}, {pipeline_mode = #tpu.pipeline_mode<synchronous>, transform_indices = @transform_1, window_bounds = array<i64: 256, 128>}, {pipeline_mode = #tpu.pipeline_mode<synchronous>, transform_indices = @transform_2, window_bounds = array<i64: 1, 128>}, {transform_indices = @transform_3, window_bounds = array<i64: 16, 128>}, {pipeline_mode = #tpu.pipeline_mode<synchronous>, transform_indices = @transform_4, window_bounds = array<i64: 1, 128>}, {pipeline_mode = #tpu.pipeline_mode<synchronous>, transform_indices = @transform_5, window_bounds = array<i64: 1, 128>}, {transform_indices = @transform_6, window_bounds = array<i64: 16, 128>}]} {
    %c0 = arith.constant 0 : index
    %c0_0 = arith.constant 0 : index
    %0 = vector.load %arg1[%c0, %c0_0] : memref<16x256xbf16, #tpu.memory_space<vmem>>, vector<16x256xbf16>
    %c0_1 = arith.constant 0 : index
    %c0_2 = arith.constant 0 : index
    %1 = vector.load %arg2[%c0_1, %c0_2] : memref<256x128xbf16, #tpu.memory_space<vmem>>, vector<256x128xbf16>
    %cst = arith.constant dense<0.000000e+00> : vector<16x128xf32>
    %2 = tpu.matmul %0, %1, %cst {dimension_numbers = #tpu.dot_dimension_numbers<[1], [0], [0], [1], [0, 0, 1, 1], [], []>} : vector<16x256xbf16>, vector<256x128xbf16>, vector<16x128xf32> -> vector<16x128xf32>
    %c0_3 = arith.constant 0 : index
    %c0_4 = arith.constant 0 : index
    %3 = vector.load %arg3[%c0_3, %c0_4] : memref<1x128xf32, #tpu.memory_space<vmem>>, vector<1x128xf32>
    %4 = vector.broadcast %3 : vector<1x128xf32> to vector<16x128xf32>
    %5 = arith.addf %2, %4 : vector<16x128xf32>
    %c0_5 = arith.constant 0 : index
    %c0_6 = arith.constant 0 : index
    %6 = vector.load %arg4[%c0_5, %c0_6] : memref<16x128xbf16, #tpu.memory_space<vmem>>, vector<16x128xbf16>
    %7 = arith.extf %6 : vector<16x128xbf16> to vector<16x128xf32>
    %8 = arith.addf %5, %7 : vector<16x128xf32>
    %cst_7 = arith.constant dense<0.000000e+00> : vector<16xf32>
    %9 = vector.multi_reduction <add>, %8, %cst_7 [1] : vector<16x128xf32> to vector<16xf32>
    %10 = vector.shape_cast %9 : vector<16xf32> to vector<16x1xf32>
    %cst_8 = arith.constant 1.280000e+02 : f32
    %11 = vector.broadcast %cst_8 : f32 to vector<16x1xf32>
    %12 = arith.divf %10, %11 : vector<16x1xf32>
    %13 = vector.broadcast %12 : vector<16x1xf32> to vector<16x128xf32>
    %14 = arith.subf %8, %13 : vector<16x128xf32>
    %15 = arith.mulf %14, %14 : vector<16x128xf32>
    %cst_9 = arith.constant dense<0.000000e+00> : vector<16xf32>
    %16 = vector.multi_reduction <add>, %15, %cst_9 [1] : vector<16x128xf32> to vector<16xf32>
    %17 = vector.shape_cast %16 : vector<16xf32> to vector<16x1xf32>
    %cst_10 = arith.constant 1.280000e+02 : f32
    %18 = vector.broadcast %cst_10 : f32 to vector<16x1xf32>
    %19 = arith.divf %17, %18 : vector<16x1xf32>
    %20 = vector.broadcast %12 : vector<16x1xf32> to vector<16x128xf32>
    %21 = arith.subf %8, %20 : vector<16x128xf32>
    %cst_11 = arith.constant 9.99999996E-13 : f32
    %22 = vector.broadcast %cst_11 : f32 to vector<16x1xf32>
    %23 = arith.addf %19, %22 : vector<16x1xf32>
    %24 = math.rsqrt %23 : vector<16x1xf32>
    %25 = vector.broadcast %24 : vector<16x1xf32> to vector<16x128xf32>
    %26 = arith.mulf %21, %25 : vector<16x128xf32>
    %c0_12 = arith.constant 0 : index
    %c0_13 = arith.constant 0 : index
    %27 = vector.load %arg5[%c0_12, %c0_13] : memref<1x128xf32, #tpu.memory_space<vmem>>, vector<1x128xf32>
    %28 = vector.broadcast %27 : vector<1x128xf32> to vector<16x128xf32>
    %29 = arith.mulf %26, %28 : vector<16x128xf32>
    %c0_14 = arith.constant 0 : index
    %c0_15 = arith.constant 0 : index
    %30 = vector.load %arg6[%c0_14, %c0_15] : memref<1x128xf32, #tpu.memory_space<vmem>>, vector<1x128xf32>
    %31 = vector.broadcast %30 : vector<1x128xf32> to vector<16x128xf32>
    %32 = arith.addf %29, %31 : vector<16x128xf32>
    %33 = arith.truncf %32 : vector<16x128xf32> to vector<16x128xbf16>
    %c0_16 = arith.constant 0 : index
    %c0_17 = arith.constant 0 : index
    %34 = vector.load %arg7[%c0_16, %c0_17] : memref<16x128xbf16, #tpu.memory_space<vmem>>, vector<16x128xbf16>
    tpu.vector_store %arg7[%c0_16, %c0_17], %33 {strides = array<i32>} : memref<16x128xbf16, #tpu.memory_space<vmem>>, vector<16x128xbf16>,
    return
  }
  func.func @transform_0(%arg0: i32) -> (i32, i32) {
    %c0_i32 = arith.constant 0 : i32
    %c0_i32_0 = arith.constant 0 : i32
    return %arg0, %c0_i32 : i32, i32
  }
  func.func @transform_1(%arg0: i32) -> (i32, i32) {
    %c0_i32 = arith.constant 0 : i32
    %c0_i32_0 = arith.constant 0 : i32
    %c0_i32_1 = arith.constant 0 : i32
    return %c0_i32, %c0_i32_0 : i32, i32
  }
  func.func @transform_2(%arg0: i32) -> (i32, i32) {
    %c0_i32 = arith.constant 0 : i32
    %c0_i32_0 = arith.constant 0 : i32
    %c0_i32_1 = arith.constant 0 : i32
    return %c0_i32, %c0_i32_0 : i32, i32
  }
  func.func @transform_3(%arg0: i32) -> (i32, i32) {
    %c0_i32 = arith.constant 0 : i32
    %c0_i32_0 = arith.constant 0 : i32
    return %arg0, %c0_i32 : i32, i32
  }
  func.func @transform_4(%arg0: i32) -> (i32, i32) {
    %c0_i32 = arith.constant 0 : i32
    %c0_i32_0 = arith.constant 0 : i32
    %c0_i32_1 = arith.constant 0 : i32
    return %c0_i32, %c0_i32_0 : i32, i32
  }
  func.func @transform_5(%arg0: i32) -> (i32, i32) {
    %c0_i32 = arith.constant 0 : i32
    %c0_i32_0 = arith.constant 0 : i32
    %c0_i32_1 = arith.constant 0 : i32
    return %c0_i32, %c0_i32_0 : i32, i32
  }
  func.func @transform_6(%arg0: i32) -> (i32, i32) {
    %c0_i32 = arith.constant 0 : i32
    %c0_i32_0 = arith.constant 0 : i32
    return %arg0, %c0_i32 : i32, i32
  }
}

module attributes {stable_mosaic.version = 11 : i64} {
  func.func @_vae_bottleneck_kernel(%arg0: memref<2x128xbf16, #tpu.memory_space<vmem>>, %arg1: memref<128x32xf32, #tpu.memory_space<vmem>>, %arg2: memref<1x32xf32, #tpu.memory_space<vmem>>, %arg3: memref<128x32xf32, #tpu.memory_space<vmem>>, %arg4: memref<1x32xf32, #tpu.memory_space<vmem>>, %arg5: memref<2x32xf32, #tpu.memory_space<vmem>>, %arg6: memref<32x128xf32, #tpu.memory_space<vmem>>, %arg7: memref<1x128xf32, #tpu.memory_space<vmem>>, %arg8: memref<2x32xf32, #tpu.memory_space<vmem>>, %arg9: memref<2x32xf32, #tpu.memory_space<vmem>>, %arg10: memref<2x128xf32, #tpu.memory_space<vmem>>) attributes {dimension_semantics = [], scalar_prefetch = 0 : i64, scratch_operands = 0 : i64, tpu.core_type = #tpu.core_type<tc>} {
    %c0 = arith.constant 0 : index
    %c0_0 = arith.constant 0 : index
    %0 = vector.load %arg0[%c0, %c0_0] : memref<2x128xbf16, #tpu.memory_space<vmem>>, vector<2x128xbf16>
    %1 = arith.extf %0 : vector<2x128xbf16> to vector<2x128xf32>
    %c0_1 = arith.constant 0 : index
    %c0_2 = arith.constant 0 : index
    %2 = vector.load %arg1[%c0_1, %c0_2] : memref<128x32xf32, #tpu.memory_space<vmem>>, vector<128x32xf32>
    %cst = arith.constant dense<0.000000e+00> : vector<2x32xf32>
    %3 = tpu.matmul %1, %2, %cst {dimension_numbers = #tpu.dot_dimension_numbers<[1], [0], [0], [1], [0, 0, 1, 1], [], []>} : vector<2x128xf32>, vector<128x32xf32>, vector<2x32xf32> -> vector<2x32xf32>
    %c0_3 = arith.constant 0 : index
    %c0_4 = arith.constant 0 : index
    %4 = vector.load %arg2[%c0_3, %c0_4] : memref<1x32xf32, #tpu.memory_space<vmem>>, vector<1x32xf32>
    %5 = vector.broadcast %4 : vector<1x32xf32> to vector<2x32xf32>
    %6 = arith.addf %3, %5 : vector<2x32xf32>
    %c0_5 = arith.constant 0 : index
    %c0_6 = arith.constant 0 : index
    %7 = vector.load %arg3[%c0_5, %c0_6] : memref<128x32xf32, #tpu.memory_space<vmem>>, vector<128x32xf32>
    %cst_7 = arith.constant dense<0.000000e+00> : vector<2x32xf32>
    %8 = tpu.matmul %1, %7, %cst_7 {dimension_numbers = #tpu.dot_dimension_numbers<[1], [0], [0], [1], [0, 0, 1, 1], [], []>} : vector<2x128xf32>, vector<128x32xf32>, vector<2x32xf32> -> vector<2x32xf32>
    %c0_8 = arith.constant 0 : index
    %c0_9 = arith.constant 0 : index
    %9 = vector.load %arg4[%c0_8, %c0_9] : memref<1x32xf32, #tpu.memory_space<vmem>>, vector<1x32xf32>
    %10 = vector.broadcast %9 : vector<1x32xf32> to vector<2x32xf32>
    %11 = arith.addf %8, %10 : vector<2x32xf32>
    %cst_10 = arith.constant 0.000000e+00 : f32
    %12 = vector.broadcast %cst_10 : f32 to vector<2x32xf32>
    %13 = arith.maximumf %11, %12 : vector<2x32xf32>
    %14 = math.absf %11 : vector<2x32xf32>
    %cst_11 = arith.constant 0.000000e+00 : f32
    %15 = vector.broadcast %cst_11 : f32 to vector<2x32xf32>
    %16 = arith.subf %15, %14 : vector<2x32xf32>
    %17 = math.exp %16 : vector<2x32xf32>
    %cst_12 = arith.constant 1.000000e+00 : f32
    %18 = vector.broadcast %cst_12 : f32 to vector<2x32xf32>
    %19 = arith.addf %18, %17 : vector<2x32xf32>
    %20 = math.log %19 : vector<2x32xf32>
    %21 = arith.addf %13, %20 : vector<2x32xf32>
    %c0_13 = arith.constant 0 : index
    %c0_14 = arith.constant 0 : index
    %22 = vector.load %arg5[%c0_13, %c0_14] : memref<2x32xf32, #tpu.memory_space<vmem>>, vector<2x32xf32>
    %23 = arith.mulf %21, %22 : vector<2x32xf32>
    %24 = arith.addf %6, %23 : vector<2x32xf32>
    %c0_15 = arith.constant 0 : index
    %c0_16 = arith.constant 0 : index
    %25 = vector.load %arg8[%c0_15, %c0_16] : memref<2x32xf32, #tpu.memory_space<vmem>>, vector<2x32xf32>
    tpu.vector_store %arg8[%c0_15, %c0_16], %6 {strides = array<i32>} : memref<2x32xf32, #tpu.memory_space<vmem>>, vector<2x32xf32>,
    %c0_17 = arith.constant 0 : index
    %c0_18 = arith.constant 0 : index
    %26 = vector.load %arg9[%c0_17, %c0_18] : memref<2x32xf32, #tpu.memory_space<vmem>>, vector<2x32xf32>
    tpu.vector_store %arg9[%c0_17, %c0_18], %11 {strides = array<i32>} : memref<2x32xf32, #tpu.memory_space<vmem>>, vector<2x32xf32>,
    %c0_19 = arith.constant 0 : index
    %c0_20 = arith.constant 0 : index
    %27 = vector.load %arg6[%c0_19, %c0_20] : memref<32x128xf32, #tpu.memory_space<vmem>>, vector<32x128xf32>
    %cst_21 = arith.constant dense<0.000000e+00> : vector<2x128xf32>
    %28 = tpu.matmul %24, %27, %cst_21 {dimension_numbers = #tpu.dot_dimension_numbers<[1], [0], [0], [1], [0, 0, 1, 1], [], []>} : vector<2x32xf32>, vector<32x128xf32>, vector<2x128xf32> -> vector<2x128xf32>
    %c0_22 = arith.constant 0 : index
    %c0_23 = arith.constant 0 : index
    %29 = vector.load %arg7[%c0_22, %c0_23] : memref<1x128xf32, #tpu.memory_space<vmem>>, vector<1x128xf32>
    %30 = vector.broadcast %29 : vector<1x128xf32> to vector<2x128xf32>
    %31 = arith.addf %28, %30 : vector<2x128xf32>
    %c0_24 = arith.constant 0 : index
    %c0_25 = arith.constant 0 : index
    %32 = vector.load %arg10[%c0_24, %c0_25] : memref<2x128xf32, #tpu.memory_space<vmem>>, vector<2x128xf32>
    tpu.vector_store %arg10[%c0_24, %c0_25], %31 {strides = array<i32>} : memref<2x128xf32, #tpu.memory_space<vmem>>, vector<2x128xf32>,
    return
  }
}

module attributes {stable_mosaic.version = 11 : i64} {
  func.func @kernel(%arg0: i32, %arg1: i32, %arg2: i32, %arg3: memref<16x128xbf16, #tpu.memory_space<vmem>>, %arg4: memref<128x256xbf16, #tpu.memory_space<vmem>>, %arg5: memref<1x256xf32, #tpu.memory_space<vmem>>, %arg6: memref<16x256xbf16, #tpu.memory_space<vmem>>, %arg7: memref<16x256xf32, #tpu.memory_space<vmem>>) attributes {dimension_semantics = [#tpu.dimension_semantics<parallel>, #tpu.dimension_semantics<parallel>, #tpu.dimension_semantics<arbitrary>], iteration_bounds = array<i64: 1, 1, 1>, scalar_prefetch = 0 : i64, scratch_operands = 1 : i64, tpu.core_type = #tpu.core_type<tc>, window_params = [{transform_indices = @transform_0, window_bounds = array<i64: 16, 128>}, {transform_indices = @transform_1, window_bounds = array<i64: 128, 256>}, {transform_indices = @transform_2, window_bounds = array<i64: 1, 256>}, {transform_indices = @transform_3, window_bounds = array<i64: 16, 256>}]} {
    %c0_i32 = arith.constant 0 : i32
    %0 = arith.cmpi eq, %arg2, %c0_i32 : i32
    %1 = arith.extui %0 : i1 to i32
    %c0_i32_0 = arith.constant 0 : i32
    %2 = arith.cmpi ne, %1, %c0_i32_0 : i32
    scf.if %2 {
      %cst_10 = arith.constant 0.000000e+00 : f32
      %12 = vector.broadcast %cst_10 : f32 to vector<16x256xf32>
      %c0_11 = arith.constant 0 : index
      %c0_12 = arith.constant 0 : index
      %13 = vector.load %arg7[%c0_11, %c0_12] : memref<16x256xf32, #tpu.memory_space<vmem>>, vector<16x256xf32>
      tpu.vector_store %arg7[%c0_11, %c0_12], %12 {strides = array<i32>} : memref<16x256xf32, #tpu.memory_space<vmem>>, vector<16x256xf32>,
    } else {
    }
    %c0 = arith.constant 0 : index
    %c0_1 = arith.constant 0 : index
    %3 = vector.load %arg7[%c0, %c0_1] : memref<16x256xf32, #tpu.memory_space<vmem>>, vector<16x256xf32>
    %c0_2 = arith.constant 0 : index
    %c0_3 = arith.constant 0 : index
    %4 = vector.load %arg3[%c0_2, %c0_3] : memref<16x128xbf16, #tpu.memory_space<vmem>>, vector<16x128xbf16>
    %c0_4 = arith.constant 0 : index
    %c0_5 = arith.constant 0 : index
    %5 = vector.load %arg4[%c0_4, %c0_5] : memref<128x256xbf16, #tpu.memory_space<vmem>>, vector<128x256xbf16>
    %cst = arith.constant dense<0.000000e+00> : vector<16x256xf32>
    %6 = tpu.matmul %4, %5, %cst {dimension_numbers = #tpu.dot_dimension_numbers<[1], [0], [0], [1], [0, 0, 1, 1], [], []>} : vector<16x128xbf16>, vector<128x256xbf16>, vector<16x256xf32> -> vector<16x256xf32>
    %7 = arith.addf %3, %6 : vector<16x256xf32>
    %c0_6 = arith.constant 0 : index
    %c0_7 = arith.constant 0 : index
    %8 = vector.load %arg7[%c0_6, %c0_7] : memref<16x256xf32, #tpu.memory_space<vmem>>, vector<16x256xf32>
    tpu.vector_store %arg7[%c0_6, %c0_7], %7 {strides = array<i32>} : memref<16x256xf32, #tpu.memory_space<vmem>>, vector<16x256xf32>,
    %c0_i32_8 = arith.constant 0 : i32
    %9 = arith.cmpi eq, %arg2, %c0_i32_8 : i32
    %10 = arith.extui %9 : i1 to i32
    %c0_i32_9 = arith.constant 0 : i32
    %11 = arith.cmpi ne, %10, %c0_i32_9 : i32
    scf.if %11 {
      %c0_10 = arith.constant 0 : index
      %c0_11 = arith.constant 0 : index
      %12 = vector.load %arg7[%c0_10, %c0_11] : memref<16x256xf32, #tpu.memory_space<vmem>>, vector<16x256xf32>
      %c0_12 = arith.constant 0 : index
      %c0_13 = arith.constant 0 : index
      %13 = vector.load %arg5[%c0_12, %c0_13] : memref<1x256xf32, #tpu.memory_space<vmem>>, vector<1x256xf32>
      %14 = vector.broadcast %13 : vector<1x256xf32> to vector<16x256xf32>
      %15 = arith.addf %12, %14 : vector<16x256xf32>
      %16 = arith.mulf %15, %15 : vector<16x256xf32>
      %17 = arith.mulf %15, %16 : vector<16x256xf32>
      %cst_14 = arith.constant 4.471500e-02 : f32
      %18 = vector.broadcast %cst_14 : f32 to vector<16x256xf32>
      %19 = arith.mulf %18, %17 : vector<16x256xf32>
      %20 = arith.addf %15, %19 : vector<16x256xf32>
      %cst_15 = arith.constant 0.797884583 : f32
      %21 = vector.broadcast %cst_15 : f32 to vector<16x256xf32>
      %22 = arith.mulf %21, %20 : vector<16x256xf32>
      %23 = math.tanh %22 : vector<16x256xf32>
      %cst_16 = arith.constant 1.000000e+00 : f32
      %24 = vector.broadcast %cst_16 : f32 to vector<16x256xf32>
      %25 = arith.addf %24, %23 : vector<16x256xf32>
      %cst_17 = arith.constant 5.000000e-01 : f32
      %26 = vector.broadcast %cst_17 : f32 to vector<16x256xf32>
      %27 = arith.mulf %26, %25 : vector<16x256xf32>
      %28 = arith.mulf %15, %27 : vector<16x256xf32>
      %29 = arith.truncf %28 : vector<16x256xf32> to vector<16x256xbf16>
      %c0_18 = arith.constant 0 : index
      %c0_19 = arith.constant 0 : index
      %30 = vector.load %arg6[%c0_18, %c0_19] : memref<16x256xbf16, #tpu.memory_space<vmem>>, vector<16x256xbf16>
      tpu.vector_store %arg6[%c0_18, %c0_19], %29 {strides = array<i32>} : memref<16x256xbf16, #tpu.memory_space<vmem>>, vector<16x256xbf16>,
    } else {
    }
    return
  }
  func.func @transform_0(%arg0: i32, %arg1: i32, %arg2: i32) -> (i32, i32) {
    %c0_i32 = arith.constant 0 : i32
    return %arg0, %arg2 : i32, i32
  }
  func.func @transform_1(%arg0: i32, %arg1: i32, %arg2: i32) -> (i32, i32) {
    %c0_i32 = arith.constant 0 : i32
    return %arg2, %arg1 : i32, i32
  }
  func.func @transform_2(%arg0: i32, %arg1: i32, %arg2: i32) -> (i32, i32) {
    %c0_i32 = arith.constant 0 : i32
    %c0_i32_0 = arith.constant 0 : i32
    return %c0_i32, %arg1 : i32, i32
  }
  func.func @transform_3(%arg0: i32, %arg1: i32, %arg2: i32) -> (i32, i32) {
    %c0_i32 = arith.constant 0 : i32
    return %arg0, %arg1 : i32, i32
  }
}

module attributes {stable_mosaic.version = 11 : i64} {
  func.func @_dec_embed_kernel(%arg0: i32, %arg1: memref<1x8x128xbf16, #tpu.memory_space<vmem>>, %arg2: memref<1x1x128xf32, #tpu.memory_space<vmem>>, %arg3: memref<8x128xf32, #tpu.memory_space<vmem>>, %arg4: memref<8x128xf32, #tpu.memory_space<vmem>>, %arg5: memref<1x128xf32, #tpu.memory_space<vmem>>, %arg6: memref<1x128xf32, #tpu.memory_space<vmem>>, %arg7: memref<1x128xf32, #tpu.memory_space<vmem>>, %arg8: memref<1x8x128xbf16, #tpu.memory_space<vmem>>) attributes {dimension_semantics = [#tpu.dimension_semantics<parallel>], iteration_bounds = array<i64: 2>, scalar_prefetch = 0 : i64, scratch_operands = 0 : i64, tpu.core_type = #tpu.core_type<tc>, window_params = [{transform_indices = @transform_0, window_bounds = array<i64: 1, 8, 128>}, {transform_indices = @transform_1, window_bounds = array<i64: 1, 1, 128>}, {pipeline_mode = #tpu.pipeline_mode<synchronous>, transform_indices = @transform_2, window_bounds = array<i64: 8, 128>}, {pipeline_mode = #tpu.pipeline_mode<synchronous>, transform_indices = @transform_3, window_bounds = array<i64: 8, 128>}, {pipeline_mode = #tpu.pipeline_mode<synchronous>, transform_indices = @transform_4, window_bounds = array<i64: 1, 128>}, {pipeline_mode = #tpu.pipeline_mode<synchronous>, transform_indices = @transform_5, window_bounds = array<i64: 1, 128>}, {pipeline_mode = #tpu.pipeline_mode<synchronous>, transform_indices = @transform_6, window_bounds = array<i64: 1, 128>}, {transform_indices = @transform_7, window_bounds = array<i64: 1, 8, 128>}]} {
    %c0 = arith.constant 0 : index
    %c0_0 = arith.constant 0 : index
    %0 = vector.load %arg4[%c0, %c0_0] : memref<8x128xf32, #tpu.memory_space<vmem>>, vector<8x128xf32>
    %c0_1 = arith.constant 0 : index
    %c0_2 = arith.constant 0 : index
    %1 = vector.load %arg5[%c0_1, %c0_2] : memref<1x128xf32, #tpu.memory_space<vmem>>, vector<1x128xf32>
    %2 = vector.broadcast %1 : vector<1x128xf32> to vector<8x128xf32>
    %3 = arith.addf %0, %2 : vector<8x128xf32>
    %c0_3 = arith.constant 0 : index
    %c0_4 = arith.constant 0 : index
    %4 = vector.load %arg3[%c0_3, %c0_4] : memref<8x128xf32, #tpu.memory_space<vmem>>, vector<8x128xf32>
    %5 = arith.subf %3, %4 : vector<8x128xf32>
    %c0_5 = arith.constant 0 : index
    %c0_6 = arith.constant 0 : index
    %c0_7 = arith.constant 0 : index
    %6 = vector.load %arg1[%c0_5, %c0_6, %c0_7] : memref<1x8x128xbf16, #tpu.memory_space<vmem>>, vector<1x8x128xbf16>
    %7 = vector.shape_cast %6 : vector<1x8x128xbf16> to vector<8x128xbf16>
    %8 = arith.extf %7 : vector<8x128xbf16> to vector<8x128xf32>
    %c0_8 = arith.constant 0 : index
    %c0_9 = arith.constant 0 : index
    %c0_10 = arith.constant 0 : index
    %9 = vector.load %arg2[%c0_8, %c0_9, %c0_10] : memref<1x1x128xf32, #tpu.memory_space<vmem>>, vector<1x1x128xf32>
    %10 = vector.shape_cast %9 : vector<1x1x128xf32> to vector<1x128xf32>
    %11 = tpu.iota {dimensions = array<i32: 0>} : vector<8x1xi32>
    %c0_i32 = arith.constant 0 : i32
    %12 = vector.broadcast %c0_i32 : i32 to vector<8x1xi32>
    %13 = arith.cmpi eq, %11, %12 : vector<8x1xi32>
    %14 = vector.shape_cast %13 : vector<8x1xi1> to vector<8x1xi1>
    %15 = vector.broadcast %14 : vector<8x1xi1> to vector<8x128xi1>
    %16 = vector.shape_cast %10 : vector<1x128xf32> to vector<1x128xf32>
    %17 = vector.broadcast %16 : vector<1x128xf32> to vector<8x128xf32>
    %18 = arith.select %15, %17, %8 : vector<8x128xi1>, vector<8x128xf32>
    %19 = arith.addf %18, %5 : vector<8x128xf32>
    %cst = arith.constant dense<0.000000e+00> : vector<8xf32>
    %20 = vector.multi_reduction <add>, %19, %cst [1] : vector<8x128xf32> to vector<8xf32>
    %21 = vector.shape_cast %20 : vector<8xf32> to vector<8x1xf32>
    %cst_11 = arith.constant 1.280000e+02 : f32
    %22 = vector.broadcast %cst_11 : f32 to vector<8x1xf32>
    %23 = arith.divf %21, %22 : vector<8x1xf32>
    %24 = vector.broadcast %23 : vector<8x1xf32> to vector<8x128xf32>
    %25 = arith.subf %19, %24 : vector<8x128xf32>
    %26 = arith.mulf %25, %25 : vector<8x128xf32>
    %cst_12 = arith.constant dense<0.000000e+00> : vector<8xf32>
    %27 = vector.multi_reduction <add>, %26, %cst_12 [1] : vector<8x128xf32> to vector<8xf32>
    %28 = vector.shape_cast %27 : vector<8xf32> to vector<8x1xf32>
    %cst_13 = arith.constant 1.280000e+02 : f32
    %29 = vector.broadcast %cst_13 : f32 to vector<8x1xf32>
    %30 = arith.divf %28, %29 : vector<8x1xf32>
    %31 = vector.broadcast %23 : vector<8x1xf32> to vector<8x128xf32>
    %32 = arith.subf %19, %31 : vector<8x128xf32>
    %cst_14 = arith.constant 9.99999996E-13 : f32
    %33 = vector.broadcast %cst_14 : f32 to vector<8x1xf32>
    %34 = arith.addf %30, %33 : vector<8x1xf32>
    %35 = math.rsqrt %34 : vector<8x1xf32>
    %36 = vector.broadcast %35 : vector<8x1xf32> to vector<8x128xf32>
    %37 = arith.mulf %32, %36 : vector<8x128xf32>
    %c0_15 = arith.constant 0 : index
    %c0_16 = arith.constant 0 : index
    %38 = vector.load %arg6[%c0_15, %c0_16] : memref<1x128xf32, #tpu.memory_space<vmem>>, vector<1x128xf32>
    %39 = vector.broadcast %38 : vector<1x128xf32> to vector<8x128xf32>
    %40 = arith.mulf %37, %39 : vector<8x128xf32>
    %c0_17 = arith.constant 0 : index
    %c0_18 = arith.constant 0 : index
    %41 = vector.load %arg7[%c0_17, %c0_18] : memref<1x128xf32, #tpu.memory_space<vmem>>, vector<1x128xf32>
    %42 = vector.broadcast %41 : vector<1x128xf32> to vector<8x128xf32>
    %43 = arith.addf %40, %42 : vector<8x128xf32>
    %44 = arith.truncf %43 : vector<8x128xf32> to vector<8x128xbf16>
    %c0_19 = arith.constant 0 : index
    %c0_20 = arith.constant 0 : index
    %c0_21 = arith.constant 0 : index
    %45 = vector.load %arg8[%c0_19, %c0_20, %c0_21] : memref<1x8x128xbf16, #tpu.memory_space<vmem>>, vector<1x8x128xbf16>
    %46 = vector.shape_cast %45 : vector<1x8x128xbf16> to vector<8x128xbf16>
    %47 = vector.shape_cast %44 : vector<8x128xbf16> to vector<1x8x128xbf16>
    tpu.vector_store %arg8[%c0_19, %c0_20, %c0_21], %47 {strides = array<i32>} : memref<1x8x128xbf16, #tpu.memory_space<vmem>>, vector<1x8x128xbf16>,
    return
  }
  func.func @transform_0(%arg0: i32) -> (i32, i32, i32) {
    %c0_i32 = arith.constant 0 : i32
    %c0_i32_0 = arith.constant 0 : i32
    %c0_i32_1 = arith.constant 0 : i32
    return %arg0, %c0_i32, %c0_i32_0 : i32, i32, i32
  }
  func.func @transform_1(%arg0: i32) -> (i32, i32, i32) {
    %c0_i32 = arith.constant 0 : i32
    %c0_i32_0 = arith.constant 0 : i32
    %c0_i32_1 = arith.constant 0 : i32
    return %arg0, %c0_i32, %c0_i32_0 : i32, i32, i32
  }
  func.func @transform_2(%arg0: i32) -> (i32, i32) {
    %c0_i32 = arith.constant 0 : i32
    %c0_i32_0 = arith.constant 0 : i32
    %c0_i32_1 = arith.constant 0 : i32
    return %c0_i32, %c0_i32_0 : i32, i32
  }
  func.func @transform_3(%arg0: i32) -> (i32, i32) {
    %c0_i32 = arith.constant 0 : i32
    %c0_i32_0 = arith.constant 0 : i32
    %c0_i32_1 = arith.constant 0 : i32
    return %c0_i32, %c0_i32_0 : i32, i32
  }
  func.func @transform_4(%arg0: i32) -> (i32, i32) {
    %c0_i32 = arith.constant 0 : i32
    %c0_i32_0 = arith.constant 0 : i32
    %c0_i32_1 = arith.constant 0 : i32
    return %c0_i32, %c0_i32_0 : i32, i32
  }
  func.func @transform_5(%arg0: i32) -> (i32, i32) {
    %c0_i32 = arith.constant 0 : i32
    %c0_i32_0 = arith.constant 0 : i32
    %c0_i32_1 = arith.constant 0 : i32
    return %c0_i32, %c0_i32_0 : i32, i32
  }
  func.func @transform_6(%arg0: i32) -> (i32, i32) {
    %c0_i32 = arith.constant 0 : i32
    %c0_i32_0 = arith.constant 0 : i32
    %c0_i32_1 = arith.constant 0 : i32
    return %c0_i32, %c0_i32_0 : i32, i32
  }
  func.func @transform_7(%arg0: i32) -> (i32, i32, i32) {
    %c0_i32 = arith.constant 0 : i32
    %c0_i32_0 = arith.constant 0 : i32
    %c0_i32_1 = arith.constant 0 : i32
    return %arg0, %c0_i32, %c0_i32_0 : i32, i32, i32
  }
}

module attributes {stable_mosaic.version = 11 : i64} {
  func.func @kernel(%arg0: i32, %arg1: memref<16x128xbf16, #tpu.memory_space<vmem>>, %arg2: memref<128x128xbf16, #tpu.memory_space<vmem>>, %arg3: memref<1x128xf32, #tpu.memory_space<vmem>>, %arg4: memref<1x128xf32, #tpu.memory_space<vmem>>, %arg5: memref<1x128xf32, #tpu.memory_space<vmem>>, %arg6: memref<16x128xbf16, #tpu.memory_space<vmem>>) attributes {dimension_semantics = [#tpu.dimension_semantics<parallel>], iteration_bounds = array<i64: 1>, scalar_prefetch = 0 : i64, scratch_operands = 0 : i64, tpu.core_type = #tpu.core_type<tc>, window_params = [{transform_indices = @transform_0, window_bounds = array<i64: 16, 128>}, {pipeline_mode = #tpu.pipeline_mode<synchronous>, transform_indices = @transform_1, window_bounds = array<i64: 128, 128>}, {pipeline_mode = #tpu.pipeline_mode<synchronous>, transform_indices = @transform_2, window_bounds = array<i64: 1, 128>}, {pipeline_mode = #tpu.pipeline_mode<synchronous>, transform_indices = @transform_3, window_bounds = array<i64: 1, 128>}, {pipeline_mode = #tpu.pipeline_mode<synchronous>, transform_indices = @transform_4, window_bounds = array<i64: 1, 128>}, {transform_indices = @transform_5, window_bounds = array<i64: 16, 128>}]} {
    %c0 = arith.constant 0 : index
    %c0_0 = arith.constant 0 : index
    %0 = vector.load %arg1[%c0, %c0_0] : memref<16x128xbf16, #tpu.memory_space<vmem>>, vector<16x128xbf16>
    %c0_1 = arith.constant 0 : index
    %c0_2 = arith.constant 0 : index
    %1 = vector.load %arg2[%c0_1, %c0_2] : memref<128x128xbf16, #tpu.memory_space<vmem>>, vector<128x128xbf16>
    %cst = arith.constant dense<0.000000e+00> : vector<16x128xf32>
    %2 = tpu.matmul %0, %1, %cst {dimension_numbers = #tpu.dot_dimension_numbers<[1], [0], [0], [1], [0, 0, 1, 1], [], []>} : vector<16x128xbf16>, vector<128x128xbf16>, vector<16x128xf32> -> vector<16x128xf32>
    %c0_3 = arith.constant 0 : index
    %c0_4 = arith.constant 0 : index
    %3 = vector.load %arg3[%c0_3, %c0_4] : memref<1x128xf32, #tpu.memory_space<vmem>>, vector<1x128xf32>
    %4 = vector.broadcast %3 : vector<1x128xf32> to vector<16x128xf32>
    %5 = arith.addf %2, %4 : vector<16x128xf32>
    %6 = arith.mulf %5, %5 : vector<16x128xf32>
    %7 = arith.mulf %5, %6 : vector<16x128xf32>
    %cst_5 = arith.constant 4.471500e-02 : f32
    %8 = vector.broadcast %cst_5 : f32 to vector<16x128xf32>
    %9 = arith.mulf %8, %7 : vector<16x128xf32>
    %10 = arith.addf %5, %9 : vector<16x128xf32>
    %cst_6 = arith.constant 0.797884583 : f32
    %11 = vector.broadcast %cst_6 : f32 to vector<16x128xf32>
    %12 = arith.mulf %11, %10 : vector<16x128xf32>
    %13 = math.tanh %12 : vector<16x128xf32>
    %cst_7 = arith.constant 1.000000e+00 : f32
    %14 = vector.broadcast %cst_7 : f32 to vector<16x128xf32>
    %15 = arith.addf %14, %13 : vector<16x128xf32>
    %cst_8 = arith.constant 5.000000e-01 : f32
    %16 = vector.broadcast %cst_8 : f32 to vector<16x128xf32>
    %17 = arith.mulf %16, %15 : vector<16x128xf32>
    %18 = arith.mulf %5, %17 : vector<16x128xf32>
    %cst_9 = arith.constant dense<0.000000e+00> : vector<16xf32>
    %19 = vector.multi_reduction <add>, %18, %cst_9 [1] : vector<16x128xf32> to vector<16xf32>
    %20 = vector.shape_cast %19 : vector<16xf32> to vector<16x1xf32>
    %cst_10 = arith.constant 1.280000e+02 : f32
    %21 = vector.broadcast %cst_10 : f32 to vector<16x1xf32>
    %22 = arith.divf %20, %21 : vector<16x1xf32>
    %23 = vector.broadcast %22 : vector<16x1xf32> to vector<16x128xf32>
    %24 = arith.subf %18, %23 : vector<16x128xf32>
    %25 = arith.mulf %24, %24 : vector<16x128xf32>
    %cst_11 = arith.constant dense<0.000000e+00> : vector<16xf32>
    %26 = vector.multi_reduction <add>, %25, %cst_11 [1] : vector<16x128xf32> to vector<16xf32>
    %27 = vector.shape_cast %26 : vector<16xf32> to vector<16x1xf32>
    %cst_12 = arith.constant 1.280000e+02 : f32
    %28 = vector.broadcast %cst_12 : f32 to vector<16x1xf32>
    %29 = arith.divf %27, %28 : vector<16x1xf32>
    %30 = vector.broadcast %22 : vector<16x1xf32> to vector<16x128xf32>
    %31 = arith.subf %18, %30 : vector<16x128xf32>
    %cst_13 = arith.constant 9.99999996E-13 : f32
    %32 = vector.broadcast %cst_13 : f32 to vector<16x1xf32>
    %33 = arith.addf %29, %32 : vector<16x1xf32>
    %34 = math.rsqrt %33 : vector<16x1xf32>
    %35 = vector.broadcast %34 : vector<16x1xf32> to vector<16x128xf32>
    %36 = arith.mulf %31, %35 : vector<16x128xf32>
    %c0_14 = arith.constant 0 : index
    %c0_15 = arith.constant 0 : index
    %37 = vector.load %arg4[%c0_14, %c0_15] : memref<1x128xf32, #tpu.memory_space<vmem>>, vector<1x128xf32>
    %38 = vector.broadcast %37 : vector<1x128xf32> to vector<16x128xf32>
    %39 = arith.mulf %36, %38 : vector<16x128xf32>
    %c0_16 = arith.constant 0 : index
    %c0_17 = arith.constant 0 : index
    %40 = vector.load %arg5[%c0_16, %c0_17] : memref<1x128xf32, #tpu.memory_space<vmem>>, vector<1x128xf32>
    %41 = vector.broadcast %40 : vector<1x128xf32> to vector<16x128xf32>
    %42 = arith.addf %39, %41 : vector<16x128xf32>
    %43 = arith.truncf %42 : vector<16x128xf32> to vector<16x128xbf16>
    %c0_18 = arith.constant 0 : index
    %c0_19 = arith.constant 0 : index
    %44 = vector.load %arg6[%c0_18, %c0_19] : memref<16x128xbf16, #tpu.memory_space<vmem>>, vector<16x128xbf16>
    tpu.vector_store %arg6[%c0_18, %c0_19], %43 {strides = array<i32>} : memref<16x128xbf16, #tpu.memory_space<vmem>>, vector<16x128xbf16>,
    return
  }
  func.func @transform_0(%arg0: i32) -> (i32, i32) {
    %c0_i32 = arith.constant 0 : i32
    %c0_i32_0 = arith.constant 0 : i32
    return %arg0, %c0_i32 : i32, i32
  }
  func.func @transform_1(%arg0: i32) -> (i32, i32) {
    %c0_i32 = arith.constant 0 : i32
    %c0_i32_0 = arith.constant 0 : i32
    %c0_i32_1 = arith.constant 0 : i32
    return %c0_i32, %c0_i32_0 : i32, i32
  }
  func.func @transform_2(%arg0: i32) -> (i32, i32) {
    %c0_i32 = arith.constant 0 : i32
    %c0_i32_0 = arith.constant 0 : i32
    %c0_i32_1 = arith.constant 0 : i32
    return %c0_i32, %c0_i32_0 : i32, i32
  }
  func.func @transform_3(%arg0: i32) -> (i32, i32) {
    %c0_i32 = arith.constant 0 : i32
    %c0_i32_0 = arith.constant 0 : i32
    %c0_i32_1 = arith.constant 0 : i32
    return %c0_i32, %c0_i32_0 : i32, i32
  }
  func.func @transform_4(%arg0: i32) -> (i32, i32) {
    %c0_i32 = arith.constant 0 : i32
    %c0_i32_0 = arith.constant 0 : i32
    %c0_i32_1 = arith.constant 0 : i32
    return %c0_i32, %c0_i32_0 : i32, i32
  }
  func.func @transform_5(%arg0: i32) -> (i32, i32) {
    %c0_i32 = arith.constant 0 : i32
    %c0_i32_0 = arith.constant 0 : i32
    return %arg0, %c0_i32 : i32, i32
  }
}

module attributes {stable_mosaic.version = 11 : i64} {
  func.func @kernel(%arg0: i32, %arg1: i32, %arg2: i32, %arg3: memref<16x128xbf16, #tpu.memory_space<vmem>>, %arg4: memref<128x128xbf16, #tpu.memory_space<vmem>>, %arg5: memref<1x128xf32, #tpu.memory_space<vmem>>, %arg6: memref<16x128xf32, #tpu.memory_space<vmem>>, %arg7: memref<16x128xf32, #tpu.memory_space<vmem>>) attributes {dimension_semantics = [#tpu.dimension_semantics<parallel>, #tpu.dimension_semantics<parallel>, #tpu.dimension_semantics<arbitrary>], iteration_bounds = array<i64: 1, 1, 1>, scalar_prefetch = 0 : i64, scratch_operands = 1 : i64, tpu.core_type = #tpu.core_type<tc>, window_params = [{transform_indices = @transform_0, window_bounds = array<i64: 16, 128>}, {transform_indices = @transform_1, window_bounds = array<i64: 128, 128>}, {transform_indices = @transform_2, window_bounds = array<i64: 1, 128>}, {transform_indices = @transform_3, window_bounds = array<i64: 16, 128>}]} {
    %c0_i32 = arith.constant 0 : i32
    %0 = arith.cmpi eq, %arg2, %c0_i32 : i32
    %1 = arith.extui %0 : i1 to i32
    %c0_i32_0 = arith.constant 0 : i32
    %2 = arith.cmpi ne, %1, %c0_i32_0 : i32
    scf.if %2 {
      %cst_10 = arith.constant 0.000000e+00 : f32
      %12 = vector.broadcast %cst_10 : f32 to vector<16x128xf32>
      %c0_11 = arith.constant 0 : index
      %c0_12 = arith.constant 0 : index
      %13 = vector.load %arg7[%c0_11, %c0_12] : memref<16x128xf32, #tpu.memory_space<vmem>>, vector<16x128xf32>
      tpu.vector_store %arg7[%c0_11, %c0_12], %12 {strides = array<i32>} : memref<16x128xf32, #tpu.memory_space<vmem>>, vector<16x128xf32>,
    } else {
    }
    %c0 = arith.constant 0 : index
    %c0_1 = arith.constant 0 : index
    %3 = vector.load %arg7[%c0, %c0_1] : memref<16x128xf32, #tpu.memory_space<vmem>>, vector<16x128xf32>
    %c0_2 = arith.constant 0 : index
    %c0_3 = arith.constant 0 : index
    %4 = vector.load %arg3[%c0_2, %c0_3] : memref<16x128xbf16, #tpu.memory_space<vmem>>, vector<16x128xbf16>
    %c0_4 = arith.constant 0 : index
    %c0_5 = arith.constant 0 : index
    %5 = vector.load %arg4[%c0_4, %c0_5] : memref<128x128xbf16, #tpu.memory_space<vmem>>, vector<128x128xbf16>
    %cst = arith.constant dense<0.000000e+00> : vector<16x128xf32>
    %6 = tpu.matmul %4, %5, %cst {dimension_numbers = #tpu.dot_dimension_numbers<[1], [0], [0], [1], [0, 0, 1, 1], [], []>} : vector<16x128xbf16>, vector<128x128xbf16>, vector<16x128xf32> -> vector<16x128xf32>
    %7 = arith.addf %3, %6 : vector<16x128xf32>
    %c0_6 = arith.constant 0 : index
    %c0_7 = arith.constant 0 : index
    %8 = vector.load %arg7[%c0_6, %c0_7] : memref<16x128xf32, #tpu.memory_space<vmem>>, vector<16x128xf32>
    tpu.vector_store %arg7[%c0_6, %c0_7], %7 {strides = array<i32>} : memref<16x128xf32, #tpu.memory_space<vmem>>, vector<16x128xf32>,
    %c0_i32_8 = arith.constant 0 : i32
    %9 = arith.cmpi eq, %arg2, %c0_i32_8 : i32
    %10 = arith.extui %9 : i1 to i32
    %c0_i32_9 = arith.constant 0 : i32
    %11 = arith.cmpi ne, %10, %c0_i32_9 : i32
    scf.if %11 {
      %c0_10 = arith.constant 0 : index
      %c0_11 = arith.constant 0 : index
      %12 = vector.load %arg7[%c0_10, %c0_11] : memref<16x128xf32, #tpu.memory_space<vmem>>, vector<16x128xf32>
      %c0_12 = arith.constant 0 : index
      %c0_13 = arith.constant 0 : index
      %13 = vector.load %arg5[%c0_12, %c0_13] : memref<1x128xf32, #tpu.memory_space<vmem>>, vector<1x128xf32>
      %14 = vector.broadcast %13 : vector<1x128xf32> to vector<16x128xf32>
      %15 = arith.addf %12, %14 : vector<16x128xf32>
      %c0_14 = arith.constant 0 : index
      %c0_15 = arith.constant 0 : index
      %16 = vector.load %arg6[%c0_14, %c0_15] : memref<16x128xf32, #tpu.memory_space<vmem>>, vector<16x128xf32>
      tpu.vector_store %arg6[%c0_14, %c0_15], %15 {strides = array<i32>} : memref<16x128xf32, #tpu.memory_space<vmem>>, vector<16x128xf32>,
    } else {
    }
    return
  }
  func.func @transform_0(%arg0: i32, %arg1: i32, %arg2: i32) -> (i32, i32) {
    %c0_i32 = arith.constant 0 : i32
    return %arg0, %arg2 : i32, i32
  }
  func.func @transform_1(%arg0: i32, %arg1: i32, %arg2: i32) -> (i32, i32) {
    %c0_i32 = arith.constant 0 : i32
    return %arg2, %arg1 : i32, i32
  }
  func.func @transform_2(%arg0: i32, %arg1: i32, %arg2: i32) -> (i32, i32) {
    %c0_i32 = arith.constant 0 : i32
    %c0_i32_0 = arith.constant 0 : i32
    return %c0_i32, %arg1 : i32, i32
  }
  func.func @transform_3(%arg0: i32, %arg1: i32, %arg2: i32) -> (i32, i32) {
    %c0_i32 = arith.constant 0 : i32
    return %arg0, %arg1 : i32, i32
  }
}

</mosaic_0001>

<bundles_post_ra>
// kernel: _lambda_.15
= control target key start
LH: loop header
LB: loop body
LE: loop exit
PB: predicated region body
PF: predicated region fallthrough
CT: control target
= control target key end

     0   :  { %s333_s15 = smov 0   ;;  %s359_s0 = inlined_call_operand.vmem [shape: f32[2,8,128], index: 0, kind: input, shape index: {}]   ;;  %s360_s1 = inlined_call_operand.vmem [shape: f32[8,128], index: 1, kind: input, shape index: {}]   ;;  %s361_s2 = inlined_call_operand.vmem [shape: f32[1,128], index: 2, kind: input, shape index: {}]   ;;  %s362_s3 = inlined_call_operand.vmem [shape: f32[1,128], index: 3, kind: input, shape index: {}]   ;;  %s363_s4 = inlined_call_operand.vmem [shape: bf16[2,8,128], index: 4, kind: output, shape index: {}]  }
   0x1 LB: > { %s279_s16 = sadd.s32 4294967295, %s306_s15   ;;  %p283_p0 = scmp.ge.s32.totalorder %s306_s15, 1  ;;  %s306_s15 = sphi %s333_s15, %s14_s15  }
   0x2   : > { %p161_p1 = scmp.lt.s32.totalorder %s306_s15, 3 }
   0x4   : > { %p162_p2 = pnand %p283_p0, %p161_p1 }
   0x5   : > { %p185_p3 = scmp.lt.s32.totalorder (!%p162_p2), %s279_s16, 1  ;;  %v194_v0 = vld [vmem:[%s360_s1] sm:$0xff] (!%p162_p2) }
   0x6   : > { %165 = sbr.rel (%p162_p2) target bundleno = 333 (0x14d), region = 36  ;;  %v286_v11 = vld [vmem:[%s361_s2] ss:$0 sm:$0xff] (!%p162_p2) }
   0x7   : > { %v287_v13 = vld [vmem:[%s362_s3] ss:$0 sm:$0xff] (!%p162_p2) }
   0xd   : > { %s365_s16 = smov (!%p185_p3, %s279_s16), 1 }
   0xe   : > { %s284_s17 = sshll.u32 %s365_s16, 3  ;;  %s285_s27 = sshll.u32 %s365_s16, 2 }
   0xf   : > { %s188_s22 = scalar_lea.vmem %s359_s0, %s284_s17  ;;  %s192_s30 = scalar_lea.vmem %s363_s4, %s285_s27 }
  0x10   : > { %v193_v1 = vld [vmem:[%s188_s22] sm:$0xff] }
  0x11   : > { %v195_v2 = vadd.f32 %v194_v0, %v193_v1 }
  0x13   : > { %196 = vadd.xlane.f32.xlu0 %v195_v2 }
  0xa0   : > { %v197_v3 = vpop.xlane.xlu0 %196 }
  0xa1   : > { %v199_v4 = vmul.f32 0.0078125, %v197_v3 }
  0xa3   : > { %v200_v5 = vsub.f32 %v195_v2, %v199_v4 }
  0xa5   : > { %v201_v6 = vmul.f32 %v200_v5, %v200_v5 }
  0xa7   : > { %202 = vadd.xlane.f32.xlu0 %v201_v6 }
 0x134   : > { %v203_v7 = vpop.xlane.xlu0 %202 }
 0x135   : > { %v204_v8 = vmul.f32 0.0078125, %v203_v7 }
 0x137   : > { %v205_v9 = vadd.f32 1e-12, %v204_v8 }
 0x139   : > { %298 = vrsqrt.f32 %v205_v9 }
 0x143   : > { %v299_v10 = vpop.eup %298 }
 0x144   : > { %v207_v12 = vmul.f32 %v299_v10, %v200_v5 }
 0x146   : > { %v215_v14 = vmul.f32 %v286_v11, %v207_v12 }
 0x148   : > { %v223_v15 = vadd.f32 %v287_v13, %v215_v14 }
 0x14a   : > { %v224_v16 = vpack.c.bf16 %v223_v15, %v223_v15 }
 0x14c   : > { %225 = vst [vmem:[%s192_s30] sm:$0xf] %v224_v16 }
 0x14d PF: > { %s14_s15 = sadd.s32 1, %s306_s15  }
 0x14e   : > { %p11_p4 = scmp.ge.s32.totalorder %s14_s15, 4  }
 0x150   :  { %13 = sbr.rel (!%p11_p4) target bundleno = 1 (0x1), region = 66 }

// kernel: _lambda_.17
= control target key start
LH: loop header
LB: loop body
LE: loop exit
PB: predicated region body
PF: predicated region fallthrough
CT: control target
= control target key end

     0   :  { %s832_s15 = smov 0   ;;  %s834_s16 = smov 0   ;;  %s913_s0 = inlined_call_operand.vmem [shape: f32[2,1,8], index: 0, kind: input, shape index: {}]   ;;  %s914_s1 = inlined_call_operand.vmem [shape: bf16[2,8,384], index: 1, kind: input, shape index: {}, may-alias: {1,2,3}]   ;;  %s915_s2 = inlined_call_operand.vmem [shape: bf16[2,8,384], index: 2, kind: input, shape index: {}, may-alias: {1,2,3}]   ;;  %s916_s3 = inlined_call_operand.vmem [shape: bf16[2,8,384], index: 3, kind: input, shape index: {}, may-alias: {1,2,3}]   ;;  %s917_s4 = inlined_call_operand.vmem [shape: bf16[2,8,128], index: 4, kind: output, shape index: {}]  }
   0x1   :  { %s836_s17 = smov 0  }
   0x2 LB: > { %s26_s18 = sadd.s32 1, %s798_s16  ;;  %p689_p0 = scmp.ge.s32.totalorder %s802_s17, 1  ;;  %s802_s17 = sphi %s836_s17, %s14_s17   ;;  %s798_s16 = sphi %s834_s16, %s919_s16   ;;  %s794_s15 = sphi %s832_s15, %s918_s15  }
   0x3   : > { %p28_p1 = scmp.ge.s32.totalorder %s26_s18, 2  ;;  %p227_p2 = scmp.lt.s32.totalorder %s802_s17, 3 }
   0x5   : > { %s921_s18 = smov (%p28_p1, %s26_s18), 0  ;;  %p228_p3 = pnand %p689_p0, %p227_p2 }
   0x6   : > { %p279_p4 = scmp.lt.s32.totalorder (!%p228_p3), %s794_s15, 1  ;;  %v804_v0 = vmov (!%p228_p3), 0.0   ;;  %vm805_vm0 = vmmov (!%p228_p3), 0   ;;  %vm330_vm1 = vcmask (!%p228_p3), 523264   ;;  %v325_v4 = vlaneseq (!%p228_p3)  ;;  %s806_s30 = smov (!%p228_p3), 64  }
   0x7   : > { %231 = sbr.rel (%p228_p3) target bundleno = 1427 (0x593), region = 36  ;;  %715 = vmatprep.subr.bf16.mxu0 (!%p228_p3), %v804_v0  ;;  %717 = vmatprep.mubr.msk.bf16.mxu0 (!%p228_p3), %vm805_vm0, %v804_v0  ;;  %vm377_vm2 = vcmask (!%p228_p3), 64512   ;;  %vm393_vm3 = vcmask (!%p228_p3), 1043456  }
   0x8   : > { %721 = vmatprep.subr.bf16.mxu1 (!%p228_p3), %v804_v0  ;;  %723 = vmatprep.mubr.msk.bf16.mxu1 (!%p228_p3), %vm805_vm0, %v804_v0  ;;  %v326_v7 = vshrl.u32 (!%p228_p3), %v325_v4, 7 }
   0xa   : > { %v327_v9 = vsub.s32 (!%p228_p3), 0, %v326_v7 }
   0xe   : > { %s923_s15 = smov (!%p279_p4, %s794_s15), 1 }
   0xf   : > { %s859_s19 = smul.u32 12, %s923_s15  ;;  %s281_s29 = scalar_lea.vmem %s913_s0, %s923_s15 }
  0x10   : > { %v318_v5 = vld [vmem:[%s281_s29] sm:$0x1]  ;;  %s693_s9 = sshll.u32 %s923_s15, 2 }
  0x11   : > { %s704_s20 = sadd.s32 4, %s859_s19  ;;  %s289_s26 = scalar_lea.vmem %s914_s1, %s859_s19  ;;  %v319_v6 = vsub.f32 1.0, %v318_v5 }
  0x12   : > { %s298_s23 = scalar_lea.vmem %s915_s2, %s704_s20  ;;  %v321_v3 = vld [vmem:[%s289_s26] sm:$0xf]  ;;  %s706_s5 = sadd.s32 8, %s859_s19 }
  0x13   : > { %v322_v1 = vld [vmem:[%s298_s23] sm:$0xf]  ;;  %v320_v8 = vmul.f32 -1e+09, %v319_v6  ;;  %v696_v18 = vcombine.low %v321_v3, %v321_v3  ;;  %s308_s8 = scalar_lea.vmem %s916_s3, %s706_s5  ;;  %s316_s12 = scalar_lea.vmem %s917_s4, %s693_s9 }
  0x14   : > { %v335_v2 = vsel %vm330_vm1, %v322_v1, 0  ;;  %v697_v17 = vcombine.low %v322_v1, %v322_v1  ;;  %v323_v24 = vld [vmem:[%s308_s8] sm:$0xf] }
  0x15   : > { %716 = vmatpush3.bf16.xpose.msra.mxu0 %v335_v2  ;;  %v328_v10 = vrot.slane %v320_v8, %v327_v9  ;;  %v395_v25 = vsel %vm393_vm3, %v323_v24, 0  ;;  %v699_v43 = vcombine.low %v323_v24, %v323_v24 }
  0x16   : > { %733 = vmatprep.subr.bf16.mxu0 %v804_v0  ;;  %445 = vrot.lane.b32.xlu1 %v697_v17, %s806_s30 }
  0x17   : > { %722 = vmatpush3.bf16.msra.mxu1 %v395_v25 }
  0x18   : > { %727 = vmatprep.subr.bf16.mxu1 %v804_v0 }
  0x1a   : > { %440 = vrot.lane.b32.xlu1 %v696_v18, %s806_s30 }
  0x1c   : > { %718 = vmatmul.mubr.msk.bf16.vlgmr.msra.gmra.mrb[0].mxu0 %vm330_vm1, %v321_v3 }
  0x1d   : > { %735 = vmatprep.mubr.msk.bf16.mxu0 %vm805_vm0, %v804_v0 }
  0x88   : > { %v446_v28 = vpop.permute.xlu1 %445 }
  0x89   : > { %v451_v30 = vsel %vm330_vm1, %v446_v28, 0 }
  0x8c   : > { %v441_v32 = vpop.permute.xlu1 %440 }
  0xef   : > { %v371_v11 = vpop.f32.mrb[0].mxu0 }
  0xf0   : > { %v372_v12 = vadd.f32 %v371_v11, %v328_v10  ;;  %v719_v13 = vpop.f32.mrb[1].mxu0 }
  0xf1   : > { %v374_v14 = vpop.f32.mrb[2].mxu0 }
  0xf2   : > { %v720_v15 = vpop.f32.mrb[3].mxu0  ;;  %v378_v16 = vsel %vm377_vm2, %v372_v12, -inf }
  0xf3   : > { %379 = vmax.xlane.f32.xlu0 %v378_v16 }
 0x180   : > { %v380_v19 = vpop.xlane.xlu0 %379 }
 0x181   : > { %v381_v20 = vsub.f32 %v372_v12, %v380_v19 }
 0x183   : > { %v382_v21 = vmul.f32 1.442695, %v381_v20 }
 0x185   : > { %772 = vpow2.f32 %v382_v21 }
 0x18f   : > { %v773_v22 = vpop.eup %772 }
 0x190   : > { %v384_v23 = vsel %vm377_vm2, %v773_v22, 0.0 }
 0x191   : > { %385 = vadd.xlane.f32.xlu0 %v384_v23 }
 0x21e   : > { %v386_v26 = vpop.xlane.xlu0 %385 }
 0x21f   : > { %774 = vrcp.f32 %v386_v26 }
 0x229   : > { %v775_v27 = vpop.eup %774 }
 0x22a   : > { %v388_v29 = vmul.f32 %v775_v27, %v773_v22 }
 0x22c   : > { %v389_v31 = vpack.c.bf16 %v388_v29, %v388_v29 }
 0x22e   : > { %724 = vmatmul.mubr.msk.bf16.vlgmr.msra.gmra.mrb[0].mxu1 %vm377_vm2, %v389_v31 }
 0x22f   : > { %728 = vmatpush3.bf16.xpose.msra.mxu1 %v451_v30  ;;  %729 = vmatprep.mubr.msk.bf16.mxu1 %vm805_vm0, %v804_v0 }
 0x236   : > { %730 = vmatmul.mubr.msk.bf16.vlgmr.msra.gmra.mrb[4].mxu1 %vm330_vm1, %v441_v32 }
 0x301   : > { %v431_v33 = vpop.f32.mrb[0].mxu1 }
 0x302   : > { %v725_v34 = vpop.f32.mrb[1].mxu1 }
 0x303   : > { %v434_v35 = vpop.f32.mrb[2].mxu1 }
 0x304   : > { %v726_v36 = vpop.f32.mrb[3].mxu1 }
 0x309   : > { %v487_v37 = vpop.f32.mrb[4].mxu1 }
 0x30a   : > { %v488_v38 = vadd.f32 %v487_v37, %v328_v10  ;;  %v731_v39 = vpop.f32.mrb[5].mxu1 }
 0x30b   : > { %v490_v40 = vpop.f32.mrb[6].mxu1 }
 0x30c   : > { %v732_v41 = vpop.f32.mrb[7].mxu1  ;;  %v493_v42 = vsel %vm377_vm2, %v488_v38, -inf }
 0x30d   : > { %494 = vmax.xlane.f32.xlu0 %v493_v42 }
 0x323   : > { %508 = vrot.lane.b32.xlu0 %v699_v43, %s806_s30 }
 0x39a   : > { %v495_v44 = vpop.xlane.xlu0 %494 }
 0x39b   : > { %v496_v45 = vsub.f32 %v488_v38, %v495_v44 }
 0x39d   : > { %v497_v46 = vmul.f32 1.442695, %v496_v45 }
 0x39e   : > { %v509_v49 = vpop.permute.xlu0 %508 }
 0x39f   : > { %776 = vpow2.f32 %v497_v46  ;;  %v514_v50 = vsel %vm393_vm3, %v509_v49, 0 }
 0x3a0   : > { %734 = vmatpush3.bf16.msra.mxu0 %v514_v50 }
 0x3a9   : > { %v777_v47 = vpop.eup %776 }
 0x3aa   : > { %v499_v48 = vsel %vm377_vm2, %v777_v47, 0.0 }
 0x3ab   : > { %500 = vadd.xlane.f32.xlu1 %v499_v48 }
 0x438   : > { %v501_v51 = vpop.xlane.xlu1 %500 }
 0x439   : > { %778 = vrcp.f32 %v501_v51 }
 0x443   : > { %v779_v52 = vpop.eup %778 }
 0x444   : > { %v503_v53 = vmul.f32 %v779_v52, %v777_v47 }
 0x446   : > { %v504_v54 = vpack.c.bf16 %v503_v53, %v503_v53 }
 0x448   : > { %736 = vmatmul.mubr.msk.bf16.vlgmr.msra.gmra.mrb[4].mxu0 %vm377_vm2, %v504_v54 }
 0x51b   : > { %v550_v55 = vpop.f32.mrb[4].mxu0 }
 0x51c   : > { %557 = vrot.lane.b32.xlu0 %v550_v55, %s806_s30  ;;  %v737_v56 = vpop.f32.mrb[5].mxu0 }
 0x51d   : > { %v553_v57 = vpop.f32.mrb[6].mxu0 }
 0x51e   : > { %v738_v58 = vpop.f32.mrb[7].mxu0 }
 0x58e   : > { %v558_v59 = vpop.permute.xlu0 %557 }
 0x58f   : > { %v560_v60 = vsel %vm330_vm1, %v431_v33, %v558_v59 }
 0x590   : > { %v561_v61 = vpack.c.bf16 %v560_v60, %v560_v60 }
 0x592   : > { %562 = vst [vmem:[%s316_s12] sm:$0xf] %v561_v61 }
 0x593 PF: > { %s14_s17 = sadd.s32 1, %s802_s17   ;;  %s918_s15 = smov %s798_s16 }
 0x594   : > { %p11_p5 = scmp.ge.s32.totalorder %s14_s17, 4   ;;  %s919_s16 = smov %s921_s18 }
 0x596   :  { %13 = sbr.rel (!%p11_p5) target bundleno = 2 (0x2), region = 75 }

// kernel: _lambda_.18
= control target key start
LH: loop header
LB: loop body
LE: loop exit
PB: predicated region body
PF: predicated region fallthrough
CT: control target
= control target key end

     0   :  { %v274_v0 = vmov 0.0   ;;  %vm275_vm0 = vmmov 0   ;;  %s353_s1 = inlined_call_operand.vmem [shape: bf16[128,128], index: 1, kind: input, shape index: {}]   ;;  %s354_s0 = inlined_call_operand.vmem [shape: bf16[16,128], index: 0, kind: input, shape index: {}]   ;;  %s355_s3 = inlined_call_operand.vmem [shape: bf16[16,128], index: 3, kind: input, shape index: {}]   ;;  %s356_s2 = inlined_call_operand.vmem [shape: f32[1,128], index: 2, kind: input, shape index: {}]   ;;  %s357_s4 = inlined_call_operand.vmem [shape: f32[1,128], index: 4, kind: input, shape index: {}]   ;;  %s358_s5 = inlined_call_operand.vmem [shape: f32[1,128], index: 5, kind: input, shape index: {}]   ;;  %s359_s6 = inlined_call_operand.vmem [shape: bf16[16,128], index: 6, kind: output, shape index: {}]  }
   0x1   :  { %239 = vmatprep.subr.bf16.mxu0 %v274_v0  ;;  %v261_v1 = vld [vmem:[%s353_s1] sm:$0xff]   ;;  %255 = vmatprep.mubr.msk.bf16.mxu0 %vm275_vm0, %v274_v0  ;;  %v262_v2 = vld [vmem:[%s353_s1 + $0x8] sm:$0xff]   ;;  %v263_v3 = vld [vmem:[%s353_s1 + $0x10] sm:$0xff]  }
   0x2   :  { %240 = vmatpush3.bf16.msra.mxu0 %v261_v1  ;;  %v264_v4 = vld [vmem:[%s353_s1 + $0x18] sm:$0xff]   ;;  %v265_v5 = vld [vmem:[%s353_s1 + $0x20] sm:$0xff]   ;;  %v266_v6 = vld [vmem:[%s353_s1 + $0x28] sm:$0xff]  }
   0x3   :  { %241 = vmatprep.subr.bf16.mxu0 %v274_v0  ;;  %v267_v7 = vld [vmem:[%s353_s1 + $0x30] sm:$0xff]   ;;  %v268_v8 = vld [vmem:[%s353_s1 + $0x38] sm:$0xff]   ;;  %v269_v9 = vld [vmem:[%s354_s0] sm:$0xff]  }
   0x4   :  { %v222_v10 = vld [vmem:[%s355_s3] sm:$0xff]  }
   0x5   :  { %v205_v11 = vld [vmem:[%s356_s2] ss:$0 sm:$0xff]  ;;  %v223_v12 = vunpack.c.l.bf16 %v222_v10  ;;  %v224_v20 = vunpack.c.h.bf16 %v222_v10 }
   0x6   :  { %242 = vmatpush3.bf16.msra.mxu0 %v262_v2  ;;  %v215_v38 = vld [vmem:[%s357_s4] ss:$0 sm:$0xff] }
   0x7   :  { %243 = vmatprep.subr.bf16.mxu0 %v274_v0  ;;  %v216_v42 = vld [vmem:[%s358_s5] ss:$0 sm:$0xff] }
   0xa   :  { %244 = vmatpush3.bf16.msra.mxu0 %v263_v3 }
   0xb   :  { %245 = vmatprep.subr.bf16.mxu0 %v274_v0 }
   0xe   :  { %246 = vmatpush3.bf16.msra.mxu0 %v264_v4 }
   0xf   :  { %247 = vmatprep.subr.bf16.mxu0 %v274_v0 }
  0x12   :  { %248 = vmatpush3.bf16.msra.mxu0 %v265_v5 }
  0x13   :  { %249 = vmatprep.subr.bf16.mxu0 %v274_v0 }
  0x16   :  { %250 = vmatpush3.bf16.msra.mxu0 %v266_v6 }
  0x17   :  { %251 = vmatprep.subr.bf16.mxu0 %v274_v0 }
  0x1a   :  { %252 = vmatpush3.bf16.msra.mxu0 %v267_v7 }
  0x1b   :  { %253 = vmatprep.subr.bf16.mxu0 %v274_v0 }
  0x1e   :  { %254 = vmatpush3.bf16.msra.mxu0 %v268_v8 }
  0x21   :  { %256 = vmatmul.mubr.bf16.vlgmr.msra.gmra.mrb[0].mxu0 %v269_v9 }
  0xf4   :  { %v137_v13 = vpop.f32.mrb[0].mxu0 }
  0xf5   :  { %v138_v14 = vadd.f32 %v205_v11, %v137_v13  ;;  %v257_v15 = vpop.f32.mrb[1].mxu0 }
  0xf6   :  { %v140_v16 = vpop.f32.mrb[2].mxu0 }
  0xf7   :  { %v141_v17 = vadd.f32 %v205_v11, %v140_v16  ;;  %v258_v18 = vpop.f32.mrb[3].mxu0  ;;  %v148_v19 = vadd.f32 %v223_v12, %v138_v14 }
  0xf9   :  { %150 = vadd.xlane.f32.xlu0 %v148_v19  ;;  %v149_v21 = vadd.f32 %v224_v20, %v141_v17 }
  0xfd   :  { %152 = vadd.xlane.f32.xlu0 %v149_v21 }
 0x186   :  { %v151_v22 = vpop.xlane.xlu0 %150 }
 0x187   :  { %v155_v23 = vmul.f32 0.0078125, %v151_v22 }
 0x189   :  { %v157_v24 = vsub.f32 %v148_v19, %v155_v23 }
 0x18a   :  { %v153_v25 = vpop.xlane.xlu0 %152 }
 0x18b   :  { %v156_v26 = vmul.f32 0.0078125, %v153_v25  ;;  %v159_v27 = vmul.f32 %v157_v24, %v157_v24 }
 0x18d   :  { %v158_v28 = vsub.f32 %v149_v21, %v156_v26  ;;  %161 = vadd.xlane.f32.xlu1 %v159_v27 }
 0x18f   :  { %v160_v29 = vmul.f32 %v158_v28, %v158_v28 }
 0x191   :  { %163 = vadd.xlane.f32.xlu1 %v160_v29 }
 0x21a   :  { %v162_v30 = vpop.xlane.xlu1 %161 }
 0x21b   :  { %v165_v31 = vmul.f32 0.0078125, %v162_v30 }
 0x21d   :  { %v167_v32 = vadd.f32 1e-12, %v165_v31 }
 0x21e   :  { %v164_v33 = vpop.xlane.xlu1 %163 }
 0x21f   :  { %270 = vrsqrt.f32 %v167_v32  ;;  %v166_v34 = vmul.f32 0.0078125, %v164_v33 }
 0x221   :  { %v168_v35 = vadd.f32 1e-12, %v166_v34 }
 0x223   :  { %272 = vrsqrt.f32 %v168_v35 }
 0x229   :  { %v271_v36 = vpop.eup %270 }
 0x22a   :  { %v171_v37 = vmul.f32 %v271_v36, %v157_v24 }
 0x22c   :  { %v180_v40 = vmul.f32 %v215_v38, %v171_v37 }
 0x22d   :  { %v273_v39 = vpop.eup %272 }
 0x22e   :  { %v172_v41 = vmul.f32 %v273_v39, %v158_v28  ;;  %v189_v44 = vadd.f32 %v216_v42, %v180_v40 }
 0x230   :  { %v181_v43 = vmul.f32 %v215_v38, %v172_v41 }
 0x232   :  { %v190_v45 = vadd.f32 %v216_v42, %v181_v43 }
 0x234   :  { %v228_v46 = vpack.c.bf16 %v190_v45, %v189_v44 }
 0x236   :  { %229 = vst [vmem:[%s359_s6] sm:$0xff] %v228_v46  }

// kernel: _lambda_.16
= control target key start
LH: loop header
LB: loop body
LE: loop exit
PB: predicated region body
PF: predicated region fallthrough
CT: control target
= control target key end

     0   :  { %v453_v0 = vmov 0.0   ;;  %vm454_vm0 = vmmov 0   ;;  %v455_v3 = vmov 0   ;;  %v306_v27 = vlaneseq  ;;  %s566_s1 = inlined_call_operand.vmem [shape: bf16[128,384], index: 1, kind: input, shape index: {}]   ;;  %s567_s0 = inlined_call_operand.vmem [shape: bf16[16,128], index: 0, kind: input, shape index: {}]   ;;  %s568_s2 = inlined_call_operand.vmem [shape: f32[1,384], index: 2, kind: input, shape index: {}]   ;;  %s569_s3 = inlined_call_operand.vmem [shape: bf16[16,384], index: 3, kind: output, shape index: {}]  }
   0x1   :  { %397 = vmatprep.subr.bf16.mxu1 %v453_v0  ;;  %v420_v1 = vld [vmem:[%s566_s1 + $0x4] ss:$12 sps:$4 sm:$0xff]   ;;  %413 = vmatprep.mubr.msk.bf16.mxu1 %vm454_vm0, %v453_v0  ;;  %v422_v2 = vld [vmem:[%s566_s1 + $0x8] ss:$12 sps:$4 sm:$0xff]   ;;  %v423_v4 = vld [vmem:[%s566_s1] ss:$12 sps:$4 sm:$0xff]  }
   0x2   :  { %231 = vmatprep.mubr.bf16.mxu0 %v455_v3  ;;  %199 = vmatprep.subr.bf16.mxu0 %v420_v1  ;;  %v424_v5 = vld [vmem:[%s566_s1 + $0x1c] ss:$12 sps:$4 sm:$0xff]   ;;  %v426_v6 = vld [vmem:[%s566_s1 + $0x20] ss:$12 sps:$4 sm:$0xff]   ;;  %v427_v7 = vld [vmem:[%s566_s1 + $0x18] ss:$12 sps:$4 sm:$0xff]  }
   0x3   :  { %398 = vmatpush3.bf16.msra.mxu1 %v422_v2  ;;  %200 = vmatpush1.bf16.msra.mxu0 %v423_v4  ;;  %v428_v8 = vld [vmem:[%s566_s1 + $0x34] ss:$12 sps:$4 sm:$0xff]   ;;  %v430_v9 = vld [vmem:[%s566_s1 + $0x38] ss:$12 sps:$4 sm:$0xff]   ;;  %v431_v10 = vld [vmem:[%s566_s1 + $0x30] ss:$12 sps:$4 sm:$0xff]  }
   0x4   :  { %399 = vmatprep.subr.bf16.mxu1 %v453_v0  ;;  %201 = vmatprep.subr.bf16.mxu0 %v424_v5  ;;  %v432_v11 = vld [vmem:[%s566_s1 + $0x4c] ss:$12 sps:$4 sm:$0xff]   ;;  %v434_v12 = vld [vmem:[%s566_s1 + $0x50] ss:$12 sps:$4 sm:$0xff]   ;;  %v435_v13 = vld [vmem:[%s566_s1 + $0x48] ss:$12 sps:$4 sm:$0xff]  }
   0x5   :  { %v436_v14 = vld [vmem:[%s566_s1 + $0x64] ss:$12 sps:$4 sm:$0xff]   ;;  %v438_v15 = vld [vmem:[%s566_s1 + $0x68] ss:$12 sps:$4 sm:$0xff]   ;;  %v439_v16 = vld [vmem:[%s566_s1 + $0x60] ss:$12 sps:$4 sm:$0xff]  }
   0x6   :  { %v440_v17 = vld [vmem:[%s566_s1 + $0x7c] ss:$12 sps:$4 sm:$0xff]   ;;  %v442_v18 = vld [vmem:[%s566_s1 + $0x80] ss:$12 sps:$4 sm:$0xff]   ;;  %v443_v19 = vld [vmem:[%s566_s1 + $0x78] ss:$12 sps:$4 sm:$0xff]  }
   0x7   :  { %400 = vmatpush3.bf16.msra.mxu1 %v426_v6  ;;  %202 = vmatpush1.bf16.msra.mxu0 %v427_v7  ;;  %v444_v20 = vld [vmem:[%s566_s1 + $0x94] ss:$12 sps:$4 sm:$0xff]   ;;  %v446_v21 = vld [vmem:[%s566_s1 + $0x98] ss:$12 sps:$4 sm:$0xff]   ;;  %v447_v22 = vld [vmem:[%s566_s1 + $0x90] ss:$12 sps:$4 sm:$0xff]  }
   0x8   :  { %401 = vmatprep.subr.bf16.mxu1 %v453_v0  ;;  %203 = vmatprep.subr.bf16.mxu0 %v428_v8  ;;  %v448_v23 = vld [vmem:[%s566_s1 + $0xac] ss:$12 sps:$4 sm:$0xff]   ;;  %v450_v24 = vld [vmem:[%s566_s1 + $0xb0] ss:$12 sps:$4 sm:$0xff]   ;;  %v451_v25 = vld [vmem:[%s566_s1 + $0xa8] ss:$12 sps:$4 sm:$0xff]  }
   0x9   :  { %v452_v26 = vld [vmem:[%s567_s0] sm:$0xff]   ;;  %v307_v28 = vshrl.u32 %v306_v27, 7 }
   0xa   :  { %v304_v30 = vld [vmem:[%s568_s2] sm:$0x7] }
   0xb   :  { %402 = vmatpush3.bf16.msra.mxu1 %v430_v9  ;;  %204 = vmatpush1.bf16.msra.mxu0 %v431_v10  ;;  %v316_v29 = vsub.s32 2, %v307_v28  ;;  %v308_v31 = vsub.s32 0, %v307_v28  ;;  %v312_v32 = vsub.s32 1, %v307_v28 }
   0xc   :  { %403 = vmatprep.subr.bf16.mxu1 %v453_v0  ;;  %205 = vmatprep.subr.bf16.mxu0 %v432_v11 }
   0xd   :  { %v317_v33 = vrot.slane %v304_v30, %v316_v29  ;;  %v309_v34 = vrot.slane %v304_v30, %v308_v31  ;;  %v313_v35 = vrot.slane %v304_v30, %v312_v32 }
   0xf   :  { %404 = vmatpush3.bf16.msra.mxu1 %v434_v12  ;;  %206 = vmatpush1.bf16.msra.mxu0 %v435_v13 }
  0x10   :  { %405 = vmatprep.subr.bf16.mxu1 %v453_v0  ;;  %207 = vmatprep.subr.bf16.mxu0 %v436_v14 }
  0x13   :  { %406 = vmatpush3.bf16.msra.mxu1 %v438_v15  ;;  %208 = vmatpush1.bf16.msra.mxu0 %v439_v16 }
  0x14   :  { %407 = vmatprep.subr.bf16.mxu1 %v453_v0  ;;  %209 = vmatprep.subr.bf16.mxu0 %v440_v17 }
  0x17   :  { %408 = vmatpush3.bf16.msra.mxu1 %v442_v18  ;;  %210 = vmatpush1.bf16.msra.mxu0 %v443_v19 }
  0x18   :  { %409 = vmatprep.subr.bf16.mxu1 %v453_v0  ;;  %211 = vmatprep.subr.bf16.mxu0 %v444_v20 }
  0x1b   :  { %410 = vmatpush3.bf16.msra.mxu1 %v446_v21  ;;  %212 = vmatpush1.bf16.msra.mxu0 %v447_v22 }
  0x1c   :  { %411 = vmatprep.subr.bf16.mxu1 %v453_v0  ;;  %213 = vmatprep.subr.bf16.mxu0 %v448_v23 }
  0x1f   :  { %412 = vmatpush3.bf16.msra.mxu1 %v450_v24  ;;  %214 = vmatpush1.bf16.msra.mxu0 %v451_v25 }
  0x22   :  { %414 = vmatmul.mubr.bf16.vlgmr.msra.gmra.mrb[0].mxu1 %v452_v26  ;;  %232 = vmatmul.mubr.bf16.vlgmr.msra.gmra.mrb[0].mxu0 %v452_v26 }
  0xf5   :  { %v276_v36 = vpop.f32.mrb[0].mxu1  ;;  %v233_v38 = vpop.f32.mrb[0].mxu0 }
  0xf6   :  { %v323_v37 = vadd.f32 %v317_v33, %v276_v36  ;;  %v415_v39 = vpop.f32.mrb[1].mxu1  ;;  %v321_v40 = vadd.f32 %v309_v34, %v233_v38  ;;  %v235_v41 = vpop.f32.mrb[1].mxu0 }
  0xf7   :  { %v279_v42 = vpop.f32.mrb[2].mxu1  ;;  %v322_v44 = vadd.f32 %v313_v35, %v235_v41  ;;  %v237_v46 = vpop.f32.mrb[2].mxu0 }
  0xf8   :  { %v385_v43 = vpack.c.bf16 %v323_v37, %v323_v37  ;;  %v326_v45 = vadd.f32 %v317_v33, %v279_v42  ;;  %v416_v47 = vpop.f32.mrb[3].mxu1  ;;  %v324_v48 = vadd.f32 %v309_v34, %v237_v46  ;;  %v239_v49 = vpop.f32.mrb[3].mxu0 }
  0xf9   :  { %v384_v50 = vpack.c.bf16 %v322_v44, %v321_v40  ;;  %v325_v52 = vadd.f32 %v313_v35, %v239_v49 }
  0xfa   :  { %348 = vst [vmem:[%s569_s3 + $0x8] sm:$0xf] %v385_v43  ;;  %v387_v51 = vpack.c.bf16 %v326_v45, %v326_v45 }
  0xfb   :  { %347 = vst [vmem:[%s569_s3] sm:$0xff] %v384_v50  ;;  %v386_v53 = vpack.c.bf16 %v325_v52, %v324_v48 }
  0xfc   :  { %350 = vst [vmem:[%s569_s3 + $0x14] sm:$0xf] %v387_v51 }
  0xfd   :  { %349 = vst [vmem:[%s569_s3 + $0xc] sm:$0xff] %v386_v53 }

// kernel: _lambda_.21
= control target key start
LH: loop header
LB: loop body
LE: loop exit
PB: predicated region body
PF: predicated region fallthrough
CT: control target
= control target key end

     0   :  { %16 = vsyncpa [#allocation3], 0  ;;  %v590_v3 = vmov 0.0|0.0   ;;  %vm591_vm0 = vmmov 0   ;;  %v592_v6 = vmov 0.0   ;;  %s824_s0 = inlined_call_operand.vmem [shape: bf16[2,128], index: 0, kind: input, shape index: {}]   ;;  %s825_s1 = inlined_call_operand.vmem [shape: f32[128,32], index: 1, kind: input, shape index: {}]   ;;  %s826_s2 = inlined_call_operand.vmem [shape: f32[1,32], index: 2, kind: input, shape index: {}]   ;;  %s827_s3 = inlined_call_operand.vmem [shape: f32[128,32], index: 3, kind: input, shape index: {}]   ;;  %s828_s4 = inlined_call_operand.vmem [shape: f32[1,32], index: 4, kind: input, shape index: {}]   ;;  %s829_s5 = inlined_call_operand.vmem [shape: f32[2,32], index: 5, kind: input, shape index: {}]   ;;  %s830_s6 = inlined_call_operand.vmem [shape: f32[32,128], index: 6, kind: input, shape index: {}]   ;;  %s831_s7 = inlined_call_operand.vmem [shape: f32[1,128], index: 7, kind: input, shape index: {}]   ;;  %s832_s8 = inlined_call_operand.hbm [shape: f32[2,32], index: 8, kind: output, shape index: {0}]   ;;  %s833_s9 = inlined_call_operand.hbm [shape: f32[2,32], index: 9, kind: output, shape index: {1}]   ;;  %s834_s10 = inlined_call_operand.vmem [shape: f32[2,128], index: 10, kind: output, shape index: {2}]  }
   0x1   :  { %v129_v0 = vld [vmem:[%s827_s3] sm:$0xff]  ;;  %v130_v1 = vld [vmem:[%s827_s3 + $0x8] sm:$0xff]  ;;  %v131_v2 = vld [vmem:[%s827_s3 + $0x10] sm:$0xff]  ;;  %503 = vmatprep.subr.bf16.mxu1 %v590_v3  ;;  %465 = vmatprep.mubr.msk.f32.mxu1 %vm591_vm0, %v592_v6 }
   0x2   :  { %v504_v4 = vpack.c.bf16 %v130_v1, %v129_v0  ;;  %v132_v5 = vld [vmem:[%s827_s3 + $0x18] sm:$0xff]  ;;  %479 = vmatprep.subr.bf16.mxu0 %v590_v3  ;;  %430 = vmatprep.mubr.msk.f32.mxu0 %vm591_vm0, %v592_v6  ;;  %v133_v8 = vld [vmem:[%s827_s3 + $0x20] sm:$0xff]  ;;  %v134_v9 = vld [vmem:[%s827_s3 + $0x28] sm:$0xff] }
   0x3   :  { %v507_v7 = vpack.c.bf16 %v132_v5, %v131_v2  ;;  %v36_v10 = vld [vmem:[%s825_s1] sm:$0xff]  ;;  %v37_v11 = vld [vmem:[%s825_s1 + $0x8] sm:$0xff]  ;;  %v38_v12 = vld [vmem:[%s825_s1 + $0x10] sm:$0xff]  ;;  %v510_v14 = vpack.c.bf16 %v134_v9, %v133_v8 }
   0x4   :  { %505 = vmatpush3.bf16.msra.mxu1 %v504_v4  ;;  %v39_v13 = vld [vmem:[%s825_s1 + $0x18] sm:$0xff]  ;;  %v480_v15 = vpack.c.bf16 %v37_v11, %v36_v10  ;;  %v135_v16 = vld [vmem:[%s827_s3 + $0x30] sm:$0xff]  ;;  %v40_v19 = vld [vmem:[%s825_s1 + $0x20] sm:$0xff] }
   0x5   :  { %506 = vmatprep.subr.bf16.mxu1 %v590_v3  ;;  %v136_v17 = vld [vmem:[%s827_s3 + $0x38] sm:$0xff]  ;;  %v483_v18 = vpack.c.bf16 %v39_v13, %v38_v12  ;;  %v41_v20 = vld [vmem:[%s825_s1 + $0x28] sm:$0xff] }
   0x6   :  { %481 = vmatpush3.bf16.msra.mxu0 %v480_v15  ;;  %v513_v21 = vpack.c.bf16 %v136_v17, %v135_v16 }
   0x7   :  { %482 = vmatprep.subr.bf16.mxu0 %v590_v3 }
   0x8   :  { %508 = vmatpush3.bf16.msra.mxu1 %v507_v7 }
   0x9   :  { %509 = vmatprep.subr.bf16.mxu1 %v590_v3 }
   0xc   :  { %511 = vmatpush3.bf16.msra.mxu1 %v510_v14 }
   0xd   :  { %17 = vsyncpa [#allocation5], 0  ;;  %512 = vmatprep.subr.bf16.mxu1 %v590_v3  ;;  %v137_v22 = vld [vmem:[%s827_s3 + $0x40] sm:$0xff]  ;;  %v138_v23 = vld [vmem:[%s827_s3 + $0x48] sm:$0xff]  ;;  %484 = vmatpush3.bf16.msra.mxu0 %v483_v18  ;;  %v486_v24 = vpack.c.bf16 %v41_v20, %v40_v19  ;;  %vm234_vm1 = vcmask 254976   ;;  %vm248_vm2 = vcmask 261120  }
   0xe   :  { %485 = vmatprep.subr.bf16.mxu0 %v590_v3  ;;  %v42_v25 = vld [vmem:[%s825_s1 + $0x30] sm:$0xff]  ;;  %v43_v26 = vld [vmem:[%s825_s1 + $0x38] sm:$0xff]  ;;  %v516_v27 = vpack.c.bf16 %v138_v23, %v137_v22  ;;  %v44_v31 = vld [vmem:[%s825_s1 + $0x40] sm:$0xff]  ;;  %s594_s29 = smov [#allocation4]  }
   0xf   :  { %v139_v28 = vld [vmem:[%s827_s3 + $0x50] sm:$0xff]  ;;  %v140_v29 = vld [vmem:[%s827_s3 + $0x58] sm:$0xff]  ;;  %v489_v30 = vpack.c.bf16 %v43_v26, %v42_v25  ;;  %v45_v32 = vld [vmem:[%s825_s1 + $0x48] sm:$0xff]  ;;  %s339_s30 = sshll.u32 %s594_s29, 4  ;;  %s340_s30 = int_to_ptr.vmem [resolvable:$true] %s339_s30 }
  0x10   :  { %514 = vmatpush3.bf16.msra.mxu1 %v513_v21  ;;  %v519_v33 = vpack.c.bf16 %v140_v29, %v139_v28  ;;  %v141_v34 = vld [vmem:[%s827_s3 + $0x60] sm:$0xff]  ;;  %v142_v35 = vld [vmem:[%s827_s3 + $0x68] sm:$0xff]  ;;  %v492_v36 = vpack.c.bf16 %v45_v32, %v44_v31  ;;  %v46_v37 = vld [vmem:[%s825_s1 + $0x50] sm:$0xff] }
  0x11   :  { %515 = vmatprep.subr.bf16.mxu1 %v590_v3  ;;  %487 = vmatpush3.bf16.msra.mxu0 %v486_v24  ;;  %v47_v38 = vld [vmem:[%s825_s1 + $0x58] sm:$0xff]  ;;  %v522_v39 = vpack.c.bf16 %v142_v35, %v141_v34  ;;  %v143_v40 = vld [vmem:[%s827_s3 + $0x70] sm:$0xff]  ;;  %v48_v43 = vld [vmem:[%s825_s1 + $0x60] sm:$0xff] }
  0x12   :  { %488 = vmatprep.subr.bf16.mxu0 %v590_v3  ;;  %v144_v41 = vld [vmem:[%s827_s3 + $0x78] sm:$0xff]  ;;  %v495_v42 = vpack.c.bf16 %v47_v38, %v46_v37  ;;  %v49_v44 = vld [vmem:[%s825_s1 + $0x68] sm:$0xff]  ;;  %v34_v46 = vld [vmem:[%s824_s0] sm:$0x1] }
  0x13   :  { %v525_v45 = vpack.c.bf16 %v144_v41, %v143_v40  ;;  %v498_v47 = vpack.c.bf16 %v49_v44, %v48_v43  ;;  %v35_v48 = vunpack.c.l.bf16 %v34_v46  ;;  %v50_v49 = vld [vmem:[%s825_s1 + $0x70] sm:$0xff]  ;;  %v51_v50 = vld [vmem:[%s825_s1 + $0x78] sm:$0xff]  ;;  %v237_v52 = vld [vmem:[%s830_s6] sm:$0xff] }
  0x14   :  { %517 = vmatpush3.bf16.msra.mxu1 %v516_v27  ;;  %v501_v51 = vpack.c.bf16 %v51_v50, %v50_v49  ;;  %v238_v53 = vld [vmem:[%s830_s6 + $0x8] sm:$0xff]  ;;  %v239_v55 = vld [vmem:[%s830_s6 + $0x10] sm:$0xff]  ;;  %v240_v56 = vld [vmem:[%s830_s6 + $0x18] sm:$0xff] }
  0x15   :  { %518 = vmatprep.subr.bf16.mxu1 %v590_v3  ;;  %490 = vmatpush3.bf16.msra.mxu0 %v489_v30  ;;  %v528_v54 = vpack.c.bf16 %v238_v53, %v237_v52  ;;  %v531_v57 = vpack.c.bf16 %v240_v56, %v239_v55  ;;  %v356_v58 = vld [vmem:[%s828_s4] ss:$0 sm:$0xff] }
  0x16   :  { %491 = vmatprep.subr.bf16.mxu0 %v590_v3  ;;  %v355_v63 = vld [vmem:[%s826_s2] ss:$0 sm:$0xff]  ;;  %s593_s2 = smov [#allocation2]  }
  0x17   :  { %v231_v10 = vld [vmem:[%s829_s5] sm:$0x3]  ;;  %s329_s28 = sshll.u32 %s593_s2, 4  ;;  %s330_s28 = int_to_ptr.vmem [resolvable:$true] %s329_s28 }
  0x18   :  { %520 = vmatpush3.bf16.msra.mxu1 %v519_v33  ;;  %s542_s11 = scalar_lea.vmem %s330_s28, 32  ;;  %p547_p1 = scmp.lt.s32.totalorder %s330_s28, %s330_s28 }
  0x19   :  { %521 = vmatprep.subr.bf16.mxu1 %v590_v3  ;;  %493 = vmatpush3.bf16.msra.mxu0 %v492_v36  ;;  %p543_p0 = scmp.ne.s32.totalorder %s330_s28, %s542_s11  ;;  %p548_p2 = scmp.lt.s32.totalorder %s542_s11, %s542_s11 }
  0x1a   :  { %494 = vmatprep.subr.bf16.mxu0 %v590_v3 }
  0x1b   :  { %p549_p3 = por %p548_p2, %p547_p1 }
  0x1c   :  { %523 = vmatpush3.bf16.msra.mxu1 %v522_v39 }
  0x1d   :  { %524 = vmatprep.subr.bf16.mxu1 %v590_v3  ;;  %496 = vmatpush3.bf16.msra.mxu0 %v495_v42  ;;  %p550_p4 = pnand %p549_p3, %p543_p0 }
  0x1e   :  { %497 = vmatprep.subr.bf16.mxu0 %v590_v3 }
  0x20   :  { %526 = vmatpush3.bf16.msra.mxu1 %v525_v45 }
  0x21   :  { %499 = vmatpush3.bf16.msra.mxu0 %v498_v47 }
  0x22   :  { %500 = vmatprep.subr.bf16.mxu0 %v590_v3 }
  0x23   :  { %466 = vmatmul.mubr.f32.vlgmr.msra.gmra.mrb[0].mxu1 %v35_v48 }
  0x25   :  { %502 = vmatpush3.bf16.msra.mxu0 %v501_v51 }
  0x26   :  { %527 = vmatprep.subr.bf16.mxu0 %v590_v3 }
  0x28   :  { %431 = vmatmul.mubr.f32.vlgmr.msra.gmra.mrb[0].mxu0 %v35_v48 }
  0x29   :  { %476 = vmatprep.mubr.msk.f32.mxu0 %vm591_vm0, %v592_v6  ;;  %529 = vmatpush3.bf16.msra.mxu0 %v528_v54 }
  0x2a   :  { %530 = vmatprep.subr.bf16.mxu0 %v590_v3 }
  0x2d   :  { %532 = vmatpush3.bf16.msra.mxu0 %v531_v57 }
  0xf6   :  { %v218_v59 = vpop.f32.mrb[0].mxu1 }
  0xf7   :  { %v219_v60 = vadd.f32 %v356_v58, %v218_v59  ;;  %v467_v61 = vpop.f32.mrb[1].mxu1 }
  0xf9   :  { %v223_v62 = vand.u32 2147483647, %v219_v60  ;;  %236 = vst.msk [vmem:[#allocation4] sm:$0x3] %vm234_vm1, %v219_v60  ;;  %v222_v8 = vmax.f32 %v219_v60, 0.0 }
  0xfb   :  { %v224_v0 = vsub.f32 0.0, %v223_v62  ;;  %v125_v1 = vpop.f32.mrb[0].mxu0 }
  0xfc   :  { %v126_v3 = vadd.f32 %v355_v63, %v125_v1  ;;  %v432_v4 = vpop.f32.mrb[1].mxu0 }
  0xfd   :  { %v225_v2 = vmul.f32 1.442695, %v224_v0 }
  0xfe   :  { %235 = vst.msk [vmem:[#allocation2] sm:$0x3] %vm234_vm1, %v126_v3 }
  0xff   :  { %538 = vpow2.f32 %v225_v2 }
 0x109   :  { %v539_v5 = vpop.eup %538 }
 0x10a   :  { %v227_v6 = vadd.f32 1.0, %v539_v5 }
 0x10c   :  { %540 = vlog2.f32 %v227_v6 }
 0x116   :  { %v541_v7 = vpop.eup %540 }
 0x117   :  { %v229_v9 = vmul.f32 0.6931472, %v541_v7 }
 0x119   :  { %v230_v11 = vadd.f32 %v229_v9, %v222_v8 }
 0x11b   :  { %v232_v12 = vmul.f32 %v231_v10, %v230_v11 }
 0x11d   :  { %v233_v13 = vadd.f32 %v232_v12, %v126_v3 }
 0x11f   :  { %477 = vmatmul.mubr.msk.f32.vlgmr.msra.gmra.mrb[2].mxu0 %vm248_vm2, %v233_v13 }
 0x120   :  { %553 = shalt.err (!%p550_p4)
}
 0x121   :  { %s554_s13 = scalar_lea.hbm %s832_s8, 32 }
 0x122   :  { %p555_p5 = scmp.ne.s32.totalorder %s832_s8, %s554_s13  ;;  %p558_p6 = scmp.lt.u32.totalorder %s554_s13, %s832_s8 }
 0x124   :  { %p560_p7 = pnand %p558_p6, %p555_p5 }
 0x126   :  { %563 = shalt.err (!%p560_p7)
}
 0x127   :  { %332 = dma.vmem_to_hbm [thread:$0]  %s330_s28, 32, %s832_s8, [#allocation3]  }
 0x128   :  { %s564_s18 = scalar_lea.vmem %s340_s30, 32  ;;  %p569_p9 = scmp.lt.s32.totalorder %s340_s30, %s340_s30 }
 0x129   :  { %p565_p8 = scmp.ne.s32.totalorder %s340_s30, %s564_s18  ;;  %p570_p10 = scmp.lt.s32.totalorder %s564_s18, %s564_s18 }
 0x12b   :  { %p571_p11 = por %p570_p10, %p569_p9 }
 0x12d   :  { %p572_p12 = pnand %p571_p11, %p565_p8 }
 0x12f   :  { %575 = shalt.err (!%p572_p12)
}
 0x130   :  { %s576_s1 = scalar_lea.hbm %s833_s9, 32 }
 0x131   :  { %p577_p13 = scmp.ne.s32.totalorder %s833_s9, %s576_s1  ;;  %p580_p0 = scmp.lt.u32.totalorder %s576_s1, %s833_s9 }
 0x133   :  { %p582_p1 = pnand %p580_p0, %p577_p13 }
 0x135   :  { %585 = shalt.err (!%p582_p1)
}
 0x136   :  { %342 = dma.vmem_to_hbm [thread:$0]  %s340_s30, 32, %s833_s9, [#allocation5]   ;;  %v357_v14 = vld [vmem:[%s831_s7] ss:$0 sm:$0xff] }
 0x1f2   :  { %v318_v15 = vpop.f32.mrb[2].mxu0 }
 0x1f3   :  { %v319_v16 = vadd.f32 %v357_v14, %v318_v15  ;;  %v478_v17 = vpop.f32.mrb[3].mxu0 }
 0x1f5   :  { %322 = vst [vmem:[%s834_s10] sm:$0x3] %v319_v16 }
 0x1f6   :  { %586 = dma.done.wait [#allocation3], 32  }
 0x1f7   :  { %587 = vsyncadd [#allocation3], 4294967264 }
 0x1f8   :  { %588 = dma.done.wait [#allocation5], 32  }
 0x1f9   :  { %589 = vsyncadd [#allocation5], 4294967264 }
 0x1fa   :  { %353 = vsyncpa [#allocation3], 1 }
 0x1fb   :  { %354 = vsyncpa [#allocation5], 1 }

// kernel: _lambda_.22
= control target key start
LH: loop header
LB: loop body
LE: loop exit
PB: predicated region body
PF: predicated region fallthrough
CT: control target
= control target key end

     0   :  { %s478_s24 = smov 0   ;;  %s517_s0 = inlined_call_operand.vmem [shape: bf16[2,8,128], index: 0, kind: input, shape index: {}]   ;;  %s518_s1 = inlined_call_operand.vmem [shape: f32[2,1,128], index: 1, kind: input, shape index: {}]   ;;  %s519_s2 = inlined_call_operand.vmem [shape: f32[8,128], index: 2, kind: input, shape index: {}]   ;;  %s520_s3 = inlined_call_operand.vmem [shape: f32[8,128], index: 3, kind: input, shape index: {}]   ;;  %s521_s4 = inlined_call_operand.vmem [shape: f32[1,128], index: 4, kind: input, shape index: {}]   ;;  %s522_s5 = inlined_call_operand.vmem [shape: f32[1,128], index: 5, kind: input, shape index: {}]   ;;  %s523_s6 = inlined_call_operand.vmem [shape: f32[1,128], index: 6, kind: input, shape index: {}]   ;;  %s524_s7 = inlined_call_operand.vmem [shape: bf16[2,8,128], index: 7, kind: output, shape index: {}]  }
   0x1 LB: > { %s407_s25 = sadd.s32 4294967295, %s436_s24   ;;  %p411_p0 = scmp.ge.s32.totalorder %s436_s24, 1  ;;  %s436_s24 = sphi %s478_s24, %s17_s24  }
   0x2   : > { %p244_p1 = scmp.lt.s32.totalorder %s436_s24, 3 }
   0x4   : > { %p245_p2 = pnand %p411_p0, %p244_p1 }
   0x5   : > { %p277_p3 = scmp.lt.s32.totalorder (!%p245_p2), %s407_s25, 1  ;;  %v288_v0 = vld [vmem:[%s520_s3] sm:$0xff] (!%p245_p2)  ;;  %v302_v2 = vlaneseq (!%p245_p2) }
   0x6   : > { %248 = sbr.rel (%p245_p2) target bundleno = 336 (0x150), region = 48  ;;  %v414_v1 = vld [vmem:[%s521_s4] ss:$0 sm:$0xff] (!%p245_p2) }
   0x7   : > { %v296_v3 = vadd.f32 (!%p245_p2), %v414_v1, %v288_v0  ;;  %v303_v4 = vshrl.u32 (!%p245_p2), %v302_v2, 7  ;;  %v297_v5 = vld [vmem:[%s519_s2] sm:$0xff] (!%p245_p2) }
   0x8   : > { %v416_v20 = vld [vmem:[%s522_s5] ss:$0 sm:$0xff] (!%p245_p2) }
   0x9   : > { %v298_v6 = vsub.f32 (!%p245_p2), %v296_v3, %v297_v5  ;;  %vm304_vm0 = vcmp.eq.s32.totalorder (!%p245_p2), %v303_v4, 0  ;;  %v417_v22 = vld [vmem:[%s523_s6] ss:$0 sm:$0xff] (!%p245_p2) }
   0xd   : > { %s526_s25 = smov (!%p277_p3, %s407_s25), 1 }
   0xe   : > { %s412_s9 = sshll.u32 %s526_s25, 2  ;;  %s283_s12 = scalar_lea.vmem %s518_s1, %s526_s25 }
   0xf   : > { %s280_s15 = scalar_lea.vmem %s517_s0, %s412_s9  ;;  %v415_v8 = vld [vmem:[%s283_s12] ss:$0 sm:$0xff]  ;;  %s287_s22 = scalar_lea.vmem %s524_s7, %s412_s9 }
  0x10   : > { %v299_v7 = vld [vmem:[%s280_s15] sm:$0xf] }
  0x11   : > { %v300_v9 = vunpack.c.l.bf16 %v299_v7 }
  0x13   : > { %v313_v10 = vsel %vm304_vm0, %v415_v8, %v300_v9 }
  0x14   : > { %v314_v11 = vadd.f32 %v313_v10, %v298_v6 }
  0x16   : > { %315 = vadd.xlane.f32.xlu0 %v314_v11 }
  0xa3   : > { %v316_v12 = vpop.xlane.xlu0 %315 }
  0xa4   : > { %v318_v13 = vmul.f32 0.0078125, %v316_v12 }
  0xa6   : > { %v319_v14 = vsub.f32 %v314_v11, %v318_v13 }
  0xa8   : > { %v320_v15 = vmul.f32 %v319_v14, %v319_v14 }
  0xaa   : > { %321 = vadd.xlane.f32.xlu0 %v320_v15 }
 0x137   : > { %v322_v16 = vpop.xlane.xlu0 %321 }
 0x138   : > { %v323_v17 = vmul.f32 0.0078125, %v322_v16 }
 0x13a   : > { %v324_v18 = vadd.f32 1e-12, %v323_v17 }
 0x13c   : > { %428 = vrsqrt.f32 %v324_v18 }
 0x146   : > { %v429_v19 = vpop.eup %428 }
 0x147   : > { %v326_v21 = vmul.f32 %v429_v19, %v319_v14 }
 0x149   : > { %v334_v23 = vmul.f32 %v416_v20, %v326_v21 }
 0x14b   : > { %v342_v24 = vadd.f32 %v417_v22, %v334_v23 }
 0x14d   : > { %v343_v25 = vpack.c.bf16 %v342_v24, %v342_v24 }
 0x14f   : > { %344 = vst [vmem:[%s287_s22] sm:$0xf] %v343_v25 }
 0x150 PF: > { %s17_s24 = sadd.s32 1, %s436_s24  }
 0x151   : > { %p14_p4 = scmp.ge.s32.totalorder %s17_s24, 4  }
 0x153   :  { %16 = sbr.rel (!%p14_p4) target bundleno = 1 (0x1), region = 81 }

// kernel: _lambda_.20
= control target key start
LH: loop header
LB: loop body
LE: loop exit
PB: predicated region body
PF: predicated region fallthrough
CT: control target
= control target key end

     0   :  { %s456_s1 = inlined_call_operand.vmem [shape: bf16[256,128], index: 1, kind: input, shape index: {}]   ;;  %s457_s0 = inlined_call_operand.vmem [shape: bf16[16,256], index: 0, kind: input, shape index: {}]   ;;  %s458_s3 = inlined_call_operand.vmem [shape: bf16[16,128], index: 3, kind: input, shape index: {}]   ;;  %s459_s2 = inlined_call_operand.vmem [shape: f32[1,128], index: 2, kind: input, shape index: {}]   ;;  %s460_s4 = inlined_call_operand.vmem [shape: f32[1,128], index: 4, kind: input, shape index: {}]   ;;  %s461_s5 = inlined_call_operand.vmem [shape: f32[1,128], index: 5, kind: input, shape index: {}]   ;;  %s462_s6 = inlined_call_operand.vmem [shape: bf16[16,128], index: 6, kind: output, shape index: {}]  }
   0x1   :  { %v329_v0 = vld [vmem:[%s456_s1 + $0x40] sm:$0xff]   ;;  %v331_v2 = vld [vmem:[%s456_s1 + $0x48] sm:$0xff]   ;;  %v333_v4 = vld [vmem:[%s456_s1 + $0x50] sm:$0xff]  }
   0x2   :  { %v330_v1 = vld [vmem:[%s456_s1] sm:$0xff]   ;;  %307 = vmatprep.subr.bf16.mxu0 %v329_v0  ;;  %v332_v3 = vld [vmem:[%s456_s1 + $0x8] sm:$0xff]   ;;  %v334_v5 = vld [vmem:[%s456_s1 + $0x10] sm:$0xff]  }
   0x3   :  { %308 = vmatpush3.bf16.msra.mxu0 %v330_v1  ;;  %v335_v6 = vld [vmem:[%s456_s1 + $0x58] sm:$0xff]   ;;  %v337_v8 = vld [vmem:[%s456_s1 + $0x60] sm:$0xff]   ;;  %v339_v10 = vld [vmem:[%s456_s1 + $0x68] sm:$0xff]  }
   0x4   :  { %309 = vmatprep.subr.bf16.mxu0 %v331_v2  ;;  %v336_v7 = vld [vmem:[%s456_s1 + $0x18] sm:$0xff]   ;;  %v338_v9 = vld [vmem:[%s456_s1 + $0x20] sm:$0xff]   ;;  %v340_v12 = vld [vmem:[%s456_s1 + $0x28] sm:$0xff]  }
   0x5   :  { %v347_v11 = vld [vmem:[%s457_s0 + $0x4] ss:$8 sps:$4 sm:$0xff]   ;;  %v341_v13 = vld [vmem:[%s456_s1 + $0x70] sm:$0xff]   ;;  %v343_v15 = vld [vmem:[%s456_s1 + $0x78] sm:$0xff]  }
   0x6   :  { %203 = vmatprep.mubr.bf16.mxu0 %v347_v11  ;;  %v342_v14 = vld [vmem:[%s456_s1 + $0x30] sm:$0xff]   ;;  %v344_v16 = vld [vmem:[%s456_s1 + $0x38] sm:$0xff]   ;;  %v345_v17 = vld [vmem:[%s457_s0] ss:$8 sps:$4 sm:$0xff]  }
   0x7   :  { %310 = vmatpush3.bf16.msra.mxu0 %v332_v3  ;;  %v299_v18 = vld [vmem:[%s458_s3] sm:$0xff]  }
   0x8   :  { %311 = vmatprep.subr.bf16.mxu0 %v333_v4  ;;  %v273_v20 = vld [vmem:[%s459_s2] ss:$0 sm:$0xff]  ;;  %v300_v24 = vunpack.c.l.bf16 %v299_v18  ;;  %v301_v30 = vunpack.c.h.bf16 %v299_v18 }
   0x9   :  { %v292_v48 = vld [vmem:[%s460_s4] ss:$0 sm:$0xff] }
   0xa   :  { %v293_v52 = vld [vmem:[%s461_s5] ss:$0 sm:$0xff] }
   0xb   :  { %312 = vmatpush3.bf16.msra.mxu0 %v334_v5 }
   0xc   :  { %313 = vmatprep.subr.bf16.mxu0 %v335_v6 }
   0xf   :  { %314 = vmatpush3.bf16.msra.mxu0 %v336_v7 }
  0x10   :  { %315 = vmatprep.subr.bf16.mxu0 %v337_v8 }
  0x13   :  { %316 = vmatpush3.bf16.msra.mxu0 %v338_v9 }
  0x14   :  { %317 = vmatprep.subr.bf16.mxu0 %v339_v10 }
  0x17   :  { %318 = vmatpush3.bf16.msra.mxu0 %v340_v12 }
  0x18   :  { %319 = vmatprep.subr.bf16.mxu0 %v341_v13 }
  0x1b   :  { %320 = vmatpush3.bf16.msra.mxu0 %v342_v14 }
  0x1c   :  { %321 = vmatprep.subr.bf16.mxu0 %v343_v15 }
  0x1f   :  { %322 = vmatpush3.bf16.msra.mxu0 %v344_v16 }
  0x22   :  { %204 = vmatmul.mubr.bf16.vlgmr.msra.gmra.mrb[0].mxu0 %v345_v17 }
  0xf5   :  { %v323_v19 = vpop.f32.mrb[0].mxu0 }
  0xf6   :  { %v324_v21 = vpop.f32.mrb[1].mxu0 }
  0xf7   :  { %v325_v22 = vadd.f32 %v324_v21, %v323_v19  ;;  %v326_v23 = vpop.f32.mrb[2].mxu0 }
  0xf8   :  { %v327_v25 = vpop.f32.mrb[3].mxu0 }
  0xf9   :  { %v206_v26 = vadd.f32 %v325_v22, %v273_v20  ;;  %v328_v27 = vadd.f32 %v327_v25, %v326_v23 }
  0xfb   :  { %v209_v28 = vadd.f32 %v328_v27, %v273_v20  ;;  %v216_v29 = vadd.f32 %v300_v24, %v206_v26 }
  0xfd   :  { %218 = vadd.xlane.f32.xlu0 %v216_v29  ;;  %v217_v31 = vadd.f32 %v301_v30, %v209_v28 }
 0x101   :  { %220 = vadd.xlane.f32.xlu0 %v217_v31 }
 0x18a   :  { %v219_v32 = vpop.xlane.xlu0 %218 }
 0x18b   :  { %v223_v33 = vmul.f32 0.0078125, %v219_v32 }
 0x18d   :  { %v225_v34 = vsub.f32 %v216_v29, %v223_v33 }
 0x18e   :  { %v221_v35 = vpop.xlane.xlu0 %220 }
 0x18f   :  { %v224_v36 = vmul.f32 0.0078125, %v221_v35  ;;  %v227_v37 = vmul.f32 %v225_v34, %v225_v34 }
 0x191   :  { %v226_v38 = vsub.f32 %v217_v31, %v224_v36  ;;  %229 = vadd.xlane.f32.xlu1 %v227_v37 }
 0x193   :  { %v228_v39 = vmul.f32 %v226_v38, %v226_v38 }
 0x195   :  { %231 = vadd.xlane.f32.xlu1 %v228_v39 }
 0x21e   :  { %v230_v40 = vpop.xlane.xlu1 %229 }
 0x21f   :  { %v233_v41 = vmul.f32 0.0078125, %v230_v40 }
 0x221   :  { %v235_v42 = vadd.f32 1e-12, %v233_v41 }
 0x222   :  { %v232_v43 = vpop.xlane.xlu1 %231 }
 0x223   :  { %348 = vrsqrt.f32 %v235_v42  ;;  %v234_v44 = vmul.f32 0.0078125, %v232_v43 }
 0x225   :  { %v236_v45 = vadd.f32 1e-12, %v234_v44 }
 0x227   :  { %350 = vrsqrt.f32 %v236_v45 }
 0x22d   :  { %v349_v46 = vpop.eup %348 }
 0x22e   :  { %v239_v47 = vmul.f32 %v349_v46, %v225_v34 }
 0x230   :  { %v248_v50 = vmul.f32 %v292_v48, %v239_v47 }
 0x231   :  { %v351_v49 = vpop.eup %350 }
 0x232   :  { %v240_v51 = vmul.f32 %v351_v49, %v226_v38  ;;  %v257_v54 = vadd.f32 %v293_v52, %v248_v50 }
 0x234   :  { %v249_v53 = vmul.f32 %v292_v48, %v240_v51 }
 0x236   :  { %v258_v55 = vadd.f32 %v293_v52, %v249_v53 }
 0x238   :  { %v305_v56 = vpack.c.bf16 %v258_v55, %v257_v54 }
 0x23a   :  { %306 = vst [vmem:[%s462_s6] sm:$0xff] %v305_v56  }

// kernel: _lambda_.19
= control target key start
LH: loop header
LB: loop body
LE: loop exit
PB: predicated region body
PF: predicated region fallthrough
CT: control target
= control target key end

     0   :  { %v314_v1 = vmov 0   ;;  %v191_v18 = vlaneseq  ;;  %s395_s1 = inlined_call_operand.vmem [shape: bf16[128,256], index: 1, kind: input, shape index: {}]   ;;  %s396_s0 = inlined_call_operand.vmem [shape: bf16[16,128], index: 0, kind: input, shape index: {}]   ;;  %s397_s2 = inlined_call_operand.vmem [shape: f32[1,256], index: 2, kind: input, shape index: {}]   ;;  %s398_s3 = inlined_call_operand.vmem [shape: bf16[16,256], index: 3, kind: output, shape index: {}]  }
   0x1   :  { %v281_v0 = vld [vmem:[%s395_s1 + $0x4] ss:$8 sps:$4 sm:$0xff]   ;;  %163 = vmatprep.mubr.bf16.mxu0 %v314_v1  ;;  %v283_v2 = vld [vmem:[%s395_s1] ss:$8 sps:$4 sm:$0xff]   ;;  %v284_v3 = vld [vmem:[%s395_s1 + $0x14] ss:$8 sps:$4 sm:$0xff]  }
   0x2   :  { %131 = vmatprep.subr.bf16.mxu0 %v281_v0  ;;  %v286_v4 = vld [vmem:[%s395_s1 + $0x10] ss:$8 sps:$4 sm:$0xff]   ;;  %v287_v5 = vld [vmem:[%s395_s1 + $0x24] ss:$8 sps:$4 sm:$0xff]   ;;  %v289_v6 = vld [vmem:[%s395_s1 + $0x20] ss:$8 sps:$4 sm:$0xff]  }
   0x3   :  { %132 = vmatpush1.bf16.msra.mxu0 %v283_v2  ;;  %v290_v7 = vld [vmem:[%s395_s1 + $0x34] ss:$8 sps:$4 sm:$0xff]   ;;  %v292_v8 = vld [vmem:[%s395_s1 + $0x30] ss:$8 sps:$4 sm:$0xff]   ;;  %v293_v9 = vld [vmem:[%s395_s1 + $0x44] ss:$8 sps:$4 sm:$0xff]  }
   0x4   :  { %133 = vmatprep.subr.bf16.mxu0 %v284_v3  ;;  %v295_v10 = vld [vmem:[%s395_s1 + $0x40] ss:$8 sps:$4 sm:$0xff]   ;;  %v296_v11 = vld [vmem:[%s395_s1 + $0x54] ss:$8 sps:$4 sm:$0xff]   ;;  %v298_v12 = vld [vmem:[%s395_s1 + $0x50] ss:$8 sps:$4 sm:$0xff]  }
   0x5   :  { %v299_v13 = vld [vmem:[%s395_s1 + $0x64] ss:$8 sps:$4 sm:$0xff]   ;;  %v301_v14 = vld [vmem:[%s395_s1 + $0x60] ss:$8 sps:$4 sm:$0xff]   ;;  %v302_v15 = vld [vmem:[%s395_s1 + $0x74] ss:$8 sps:$4 sm:$0xff]  }
   0x6   :  { %v304_v16 = vld [vmem:[%s395_s1 + $0x70] ss:$8 sps:$4 sm:$0xff]   ;;  %v305_v17 = vld [vmem:[%s396_s0] sm:$0xff]   ;;  %v192_v19 = vshrl.u32 %v191_v18, 7 }
   0x7   :  { %134 = vmatpush1.bf16.msra.mxu0 %v286_v4  ;;  %v189_v21 = vld [vmem:[%s397_s2] sm:$0x3] }
   0x8   :  { %135 = vmatprep.subr.bf16.mxu0 %v287_v5  ;;  %v193_v20 = vsub.s32 0, %v192_v19  ;;  %v197_v22 = vsub.s32 1, %v192_v19 }
   0xa   :  { %v194_v23 = vrot.slane %v189_v21, %v193_v20  ;;  %v198_v24 = vrot.slane %v189_v21, %v197_v22 }
   0xb   :  { %136 = vmatpush1.bf16.msra.mxu0 %v289_v6 }
   0xc   :  { %137 = vmatprep.subr.bf16.mxu0 %v290_v7 }
   0xf   :  { %138 = vmatpush1.bf16.msra.mxu0 %v292_v8 }
  0x10   :  { %139 = vmatprep.subr.bf16.mxu0 %v293_v9 }
  0x13   :  { %140 = vmatpush1.bf16.msra.mxu0 %v295_v10 }
  0x14   :  { %141 = vmatprep.subr.bf16.mxu0 %v296_v11 }
  0x17   :  { %142 = vmatpush1.bf16.msra.mxu0 %v298_v12 }
  0x18   :  { %143 = vmatprep.subr.bf16.mxu0 %v299_v13 }
  0x1b   :  { %144 = vmatpush1.bf16.msra.mxu0 %v301_v14 }
  0x1c   :  { %145 = vmatprep.subr.bf16.mxu0 %v302_v15 }
  0x1f   :  { %146 = vmatpush1.bf16.msra.mxu0 %v304_v16 }
  0x22   :  { %164 = vmatmul.mubr.bf16.vlgmr.msra.gmra.mrb[0].mxu0 %v305_v17 }
  0xf5   :  { %v165_v25 = vpop.f32.mrb[0].mxu0 }
  0xf6   :  { %v201_v26 = vadd.f32 %v194_v23, %v165_v25  ;;  %v167_v27 = vpop.f32.mrb[1].mxu0 }
  0xf7   :  { %v202_v28 = vadd.f32 %v198_v24, %v167_v27  ;;  %v169_v29 = vpop.f32.mrb[2].mxu0 }
  0xf8   :  { %v205_v30 = vmul.f32 %v201_v26, %v201_v26  ;;  %v203_v31 = vadd.f32 %v194_v23, %v169_v29  ;;  %v171_v32 = vpop.f32.mrb[3].mxu0 }
  0xf9   :  { %v206_v33 = vmul.f32 %v202_v28, %v202_v28  ;;  %v204_v34 = vadd.f32 %v198_v24, %v171_v32 }
  0xfa   :  { %v209_v35 = vmul.f32 %v205_v30, %v201_v26  ;;  %v207_v36 = vmul.f32 %v203_v31, %v203_v31 }
  0xfb   :  { %v210_v37 = vmul.f32 %v206_v33, %v202_v28  ;;  %v208_v38 = vmul.f32 %v204_v34, %v204_v34 }
  0xfc   :  { %v213_v39 = vmul.f32 0.044715, %v209_v35  ;;  %v211_v40 = vmul.f32 %v207_v36, %v203_v31 }
  0xfd   :  { %v214_v41 = vmul.f32 0.044715, %v210_v37  ;;  %v212_v42 = vmul.f32 %v208_v38, %v204_v34 }
  0xfe   :  { %v217_v43 = vadd.f32 %v213_v39, %v201_v26  ;;  %v215_v44 = vmul.f32 0.044715, %v211_v40 }
  0xff   :  { %v218_v45 = vadd.f32 %v214_v41, %v202_v28  ;;  %v216_v46 = vmul.f32 0.044715, %v212_v42 }
 0x100   :  { %v221_v47 = vmul.f32 0.7978846, %v217_v43  ;;  %v219_v48 = vadd.f32 %v215_v44, %v203_v31 }
 0x101   :  { %v222_v49 = vmul.f32 0.7978846, %v218_v45  ;;  %v220_v50 = vadd.f32 %v216_v46, %v204_v34 }
 0x102   :  { %306 = vtanh.f32 %v221_v47  ;;  %v223_v51 = vmul.f32 0.7978846, %v219_v48 }
 0x103   :  { %308 = vtanh.f32 %v222_v49  ;;  %v224_v52 = vmul.f32 0.7978846, %v220_v50 }
 0x104   :  { %310 = vtanh.f32 %v223_v51 }
 0x105   :  { %312 = vtanh.f32 %v224_v52 }
 0x10c   :  { %v307_v53 = vpop.eup %306 }
 0x10d   :  { %v309_v54 = vpop.eup %308  ;;  %v229_v55 = vadd.f32 1.0, %v307_v53 }
 0x10e   :  { %v311_v56 = vpop.eup %310  ;;  %v230_v57 = vadd.f32 1.0, %v309_v54 }
 0x10f   :  { %v313_v58 = vpop.eup %312  ;;  %v233_v59 = vmul.f32 0.5, %v229_v55  ;;  %v231_v60 = vadd.f32 1.0, %v311_v56 }
 0x110   :  { %v234_v61 = vmul.f32 0.5, %v230_v57  ;;  %v232_v62 = vadd.f32 1.0, %v313_v58 }
 0x111   :  { %v237_v63 = vmul.f32 %v233_v59, %v201_v26  ;;  %v235_v0 = vmul.f32 0.5, %v231_v60 }
 0x112   :  { %v238_v1 = vmul.f32 %v234_v61, %v202_v28  ;;  %v236_v2 = vmul.f32 0.5, %v232_v62 }
 0x113   :  { %v239_v3 = vmul.f32 %v235_v0, %v203_v31 }
 0x114   :  { %v278_v4 = vpack.c.bf16 %v238_v1, %v237_v63  ;;  %v240_v5 = vmul.f32 %v236_v2, %v204_v34 }
 0x116   :  { %253 = vst [vmem:[%s398_s3] sm:$0xff] %v278_v4  ;;  %v279_v6 = vpack.c.bf16 %v240_v5, %v239_v3 }
 0x118   :  { %254 = vst [vmem:[%s398_s3 + $0x8] sm:$0xff] %v279_v6 }

// kernel: _lambda_.29
= control target key start
LH: loop header
LB: loop body
LE: loop exit
PB: predicated region body
PF: predicated region fallthrough
CT: control target
= control target key end

     0   :  { %v250_v1 = vmov 0.0   ;;  %vm251_vm0 = vmmov 0   ;;  %s317_s0 = inlined_call_operand.vmem [shape: bf16[16,128], index: 0, kind: input, shape index: {}]   ;;  %s318_s1 = inlined_call_operand.vmem [shape: bf16[128,128], index: 1, kind: input, shape index: {}]   ;;  %s319_s2 = inlined_call_operand.vmem [shape: f32[1,128], index: 2, kind: input, shape index: {}]   ;;  %s320_s3 = inlined_call_operand.hbm [shape: f32[16,128], index: 3, kind: output, shape index: {}]  }
   0x1   :  { %v217_v0 = vld [vmem:[%s318_s1] sm:$0xff]   ;;  %192 = vmatprep.subr.bf16.mxu0 %v250_v1  ;;  %v218_v2 = vld [vmem:[%s318_s1 + $0x8] sm:$0xff]   ;;  %208 = vmatprep.mubr.msk.bf16.mxu0 %vm251_vm0, %v250_v1  ;;  %v219_v3 = vld [vmem:[%s318_s1 + $0x10] sm:$0xff]  }
   0x2   :  { %193 = vmatpush3.bf16.msra.mxu0 %v217_v0 }
   0x3   :  { %194 = vmatprep.subr.bf16.mxu0 %v250_v1 }
   0x6   :  { %195 = vmatpush3.bf16.msra.mxu0 %v218_v2 }
   0x7   :  { %196 = vmatprep.subr.bf16.mxu0 %v250_v1 }
   0x8   :  { %8 = vsyncpa [#allocation4], 0  ;;  %v220_v4 = vld [vmem:[%s318_s1 + $0x18] sm:$0xff]   ;;  %v221_v5 = vld [vmem:[%s318_s1 + $0x20] sm:$0xff]   ;;  %s252_s5 = smov [#allocation3]  }
   0x9   :  { %v222_v6 = vld [vmem:[%s318_s1 + $0x28] sm:$0xff]   ;;  %v223_v7 = vld [vmem:[%s318_s1 + $0x30] sm:$0xff]   ;;  %v224_v8 = vld [vmem:[%s318_s1 + $0x38] sm:$0xff]   ;;  %s162_s6 = sshll.u32 %s252_s5, 4  ;;  %s163_s6 = int_to_ptr.vmem [resolvable:$true] %s162_s6 }
   0xa   :  { %197 = vmatpush3.bf16.msra.mxu0 %v219_v3  ;;  %v225_v9 = vld [vmem:[%s317_s0] sm:$0xff]   ;;  %s226_s1 = scalar_lea.vmem %s163_s6, 256  ;;  %p231_p1 = scmp.lt.s32.totalorder %s163_s6, %s163_s6 }
   0xb   :  { %198 = vmatprep.subr.bf16.mxu0 %v250_v1  ;;  %v182_v10 = vld [vmem:[%s319_s2] ss:$0 sm:$0xff]  ;;  %p227_p0 = scmp.ne.s32.totalorder %s163_s6, %s226_s1  ;;  %p232_p2 = scmp.lt.s32.totalorder %s226_s1, %s226_s1 }
   0xd   :  { %p233_p3 = por %p232_p2, %p231_p1 }
   0xe   :  { %199 = vmatpush3.bf16.msra.mxu0 %v220_v4 }
   0xf   :  { %200 = vmatprep.subr.bf16.mxu0 %v250_v1  ;;  %p234_p4 = pnand %p233_p3, %p227_p0 }
  0x12   :  { %201 = vmatpush3.bf16.msra.mxu0 %v221_v5 }
  0x13   :  { %202 = vmatprep.subr.bf16.mxu0 %v250_v1 }
  0x16   :  { %203 = vmatpush3.bf16.msra.mxu0 %v222_v6 }
  0x17   :  { %204 = vmatprep.subr.bf16.mxu0 %v250_v1 }
  0x1a   :  { %205 = vmatpush3.bf16.msra.mxu0 %v223_v7 }
  0x1b   :  { %206 = vmatprep.subr.bf16.mxu0 %v250_v1 }
  0x1e   :  { %207 = vmatpush3.bf16.msra.mxu0 %v224_v8 }
  0x21   :  { %209 = vmatmul.mubr.bf16.vlgmr.msra.gmra.mrb[0].mxu0 %v225_v9 }
  0xf4   :  { %v130_v11 = vpop.f32.mrb[0].mxu0 }
  0xf5   :  { %v153_v12 = vadd.f32 %v182_v10, %v130_v11  ;;  %v210_v13 = vpop.f32.mrb[1].mxu0 }
  0xf6   :  { %v133_v14 = vpop.f32.mrb[2].mxu0 }
  0xf7   :  { %155 = vst [vmem:[#allocation3] sm:$0xff] %v153_v12  ;;  %v154_v15 = vadd.f32 %v182_v10, %v133_v14  ;;  %v211_v16 = vpop.f32.mrb[3].mxu0 }
  0xf9   :  { %156 = vst [vmem:[#allocation3 + $0x8] sm:$0xff] %v154_v15 }
  0xfa   :  { %237 = shalt.err (!%p234_p4)
}
  0xfb   :  { %s238_s7 = scalar_lea.hbm %s320_s3, 256 }
  0xfc   :  { %p239_p5 = scmp.ne.s32.totalorder %s320_s3, %s238_s7  ;;  %p242_p6 = scmp.lt.u32.totalorder %s238_s7, %s320_s3 }
  0xfe   :  { %p244_p7 = pnand %p242_p6, %p239_p5 }
 0x100   :  { %247 = shalt.err (!%p244_p7)
}
 0x101   :  { %s253_s12 = smov 128   ;;  %s254_s13 = smov 8  }
 0x102   :  { %168 = dma.vmem_to_hbm [thread:$0]  %s163_s6, 256, %s320_s3, [#allocation4], %s253_s12, %s253_s12, %s254_s13  }
 0x103   :  { %248 = dma.done.wait [#allocation4], 256  }
 0x104   :  { %249 = vsyncadd [#allocation4], 4294967040 }
 0x105   :  { %172 = vsyncpa [#allocation4], 1 }

// kernel: _lambda_.28
= control target key start
LH: loop header
LB: loop body
LE: loop exit
PB: predicated region body
PF: predicated region fallthrough
CT: control target
= control target key end

     0   :  { %v283_v0 = vmov 0.0   ;;  %vm284_vm0 = vmmov 0   ;;  %s354_s1 = inlined_call_operand.vmem [shape: bf16[128,128], index: 1, kind: input, shape index: {}]   ;;  %s355_s0 = inlined_call_operand.vmem [shape: bf16[16,128], index: 0, kind: input, shape index: {}]   ;;  %s356_s2 = inlined_call_operand.vmem [shape: f32[1,128], index: 2, kind: input, shape index: {}]   ;;  %s357_s3 = inlined_call_operand.vmem [shape: f32[1,128], index: 3, kind: input, shape index: {}]   ;;  %s358_s4 = inlined_call_operand.vmem [shape: f32[1,128], index: 4, kind: input, shape index: {}]   ;;  %s359_s5 = inlined_call_operand.vmem [shape: bf16[16,128], index: 5, kind: output, shape index: {}]  }
   0x1   :  { %244 = vmatprep.subr.bf16.mxu0 %v283_v0  ;;  %v266_v1 = vld [vmem:[%s354_s1] sm:$0xff]   ;;  %260 = vmatprep.mubr.msk.bf16.mxu0 %vm284_vm0, %v283_v0  ;;  %v267_v2 = vld [vmem:[%s354_s1 + $0x8] sm:$0xff]   ;;  %v268_v3 = vld [vmem:[%s354_s1 + $0x10] sm:$0xff]  }
   0x2   :  { %245 = vmatpush3.bf16.msra.mxu0 %v266_v1  ;;  %v269_v4 = vld [vmem:[%s354_s1 + $0x18] sm:$0xff]   ;;  %v270_v5 = vld [vmem:[%s354_s1 + $0x20] sm:$0xff]   ;;  %v271_v6 = vld [vmem:[%s354_s1 + $0x28] sm:$0xff]  }
   0x3   :  { %246 = vmatprep.subr.bf16.mxu0 %v283_v0  ;;  %v272_v7 = vld [vmem:[%s354_s1 + $0x30] sm:$0xff]   ;;  %v273_v8 = vld [vmem:[%s354_s1 + $0x38] sm:$0xff]   ;;  %v274_v9 = vld [vmem:[%s355_s0] sm:$0xff]  }
   0x4   :  { %v214_v10 = vld [vmem:[%s356_s2] ss:$0 sm:$0xff] }
   0x5   :  { %v224_v51 = vld [vmem:[%s357_s3] ss:$0 sm:$0xff] }
   0x6   :  { %247 = vmatpush3.bf16.msra.mxu0 %v267_v2  ;;  %v225_v55 = vld [vmem:[%s358_s4] ss:$0 sm:$0xff] }
   0x7   :  { %248 = vmatprep.subr.bf16.mxu0 %v283_v0 }
   0xa   :  { %249 = vmatpush3.bf16.msra.mxu0 %v268_v3 }
   0xb   :  { %250 = vmatprep.subr.bf16.mxu0 %v283_v0 }
   0xe   :  { %251 = vmatpush3.bf16.msra.mxu0 %v269_v4 }
   0xf   :  { %252 = vmatprep.subr.bf16.mxu0 %v283_v0 }
  0x12   :  { %253 = vmatpush3.bf16.msra.mxu0 %v270_v5 }
  0x13   :  { %254 = vmatprep.subr.bf16.mxu0 %v283_v0 }
  0x16   :  { %255 = vmatpush3.bf16.msra.mxu0 %v271_v6 }
  0x17   :  { %256 = vmatprep.subr.bf16.mxu0 %v283_v0 }
  0x1a   :  { %257 = vmatpush3.bf16.msra.mxu0 %v272_v7 }
  0x1b   :  { %258 = vmatprep.subr.bf16.mxu0 %v283_v0 }
  0x1e   :  { %259 = vmatpush3.bf16.msra.mxu0 %v273_v8 }
  0x21   :  { %261 = vmatmul.mubr.bf16.vlgmr.msra.gmra.mrb[0].mxu0 %v274_v9 }
  0xf4   :  { %v134_v11 = vpop.f32.mrb[0].mxu0 }
  0xf5   :  { %v135_v12 = vadd.f32 %v214_v10, %v134_v11  ;;  %v262_v13 = vpop.f32.mrb[1].mxu0 }
  0xf6   :  { %v137_v14 = vpop.f32.mrb[2].mxu0 }
  0xf7   :  { %v141_v15 = vmul.f32 %v135_v12, %v135_v12  ;;  %v138_v16 = vadd.f32 %v214_v10, %v137_v14  ;;  %v263_v17 = vpop.f32.mrb[3].mxu0 }
  0xf9   :  { %v143_v18 = vmul.f32 %v141_v15, %v135_v12  ;;  %v142_v19 = vmul.f32 %v138_v16, %v138_v16 }
  0xfb   :  { %v145_v20 = vmul.f32 0.044715, %v143_v18  ;;  %v144_v21 = vmul.f32 %v142_v19, %v138_v16 }
  0xfd   :  { %v146_v22 = vmul.f32 0.044715, %v144_v21  ;;  %v147_v23 = vadd.f32 %v145_v20, %v135_v12 }
  0xff   :  { %v149_v24 = vmul.f32 0.7978846, %v147_v23  ;;  %v148_v25 = vadd.f32 %v146_v22, %v138_v16 }
 0x101   :  { %275 = vtanh.f32 %v149_v24  ;;  %v150_v26 = vmul.f32 0.7978846, %v148_v25 }
 0x103   :  { %277 = vtanh.f32 %v150_v26 }
 0x10b   :  { %v276_v27 = vpop.eup %275 }
 0x10c   :  { %v153_v28 = vadd.f32 1.0, %v276_v27 }
 0x10d   :  { %v278_v29 = vpop.eup %277 }
 0x10e   :  { %v155_v30 = vmul.f32 0.5, %v153_v28  ;;  %v154_v31 = vadd.f32 1.0, %v278_v29 }
 0x110   :  { %v157_v32 = vmul.f32 %v155_v30, %v135_v12  ;;  %v156_v33 = vmul.f32 0.5, %v154_v31 }
 0x112   :  { %159 = vadd.xlane.f32.xlu0 %v157_v32  ;;  %v158_v34 = vmul.f32 %v156_v33, %v138_v16 }
 0x116   :  { %161 = vadd.xlane.f32.xlu0 %v158_v34 }
 0x19f   :  { %v160_v35 = vpop.xlane.xlu0 %159 }
 0x1a0   :  { %v164_v36 = vmul.f32 0.0078125, %v160_v35 }
 0x1a2   :  { %v166_v37 = vsub.f32 %v157_v32, %v164_v36 }
 0x1a3   :  { %v162_v38 = vpop.xlane.xlu0 %161 }
 0x1a4   :  { %v165_v39 = vmul.f32 0.0078125, %v162_v38  ;;  %v168_v40 = vmul.f32 %v166_v37, %v166_v37 }
 0x1a6   :  { %v167_v41 = vsub.f32 %v158_v34, %v165_v39  ;;  %170 = vadd.xlane.f32.xlu1 %v168_v40 }
 0x1a8   :  { %v169_v42 = vmul.f32 %v167_v41, %v167_v41 }
 0x1aa   :  { %172 = vadd.xlane.f32.xlu1 %v169_v42 }
 0x233   :  { %v171_v43 = vpop.xlane.xlu1 %170 }
 0x234   :  { %v174_v44 = vmul.f32 0.0078125, %v171_v43 }
 0x236   :  { %v176_v45 = vadd.f32 1e-12, %v174_v44 }
 0x237   :  { %v173_v46 = vpop.xlane.xlu1 %172 }
 0x238   :  { %279 = vrsqrt.f32 %v176_v45  ;;  %v175_v47 = vmul.f32 0.0078125, %v173_v46 }
 0x23a   :  { %v177_v48 = vadd.f32 1e-12, %v175_v47 }
 0x23c   :  { %281 = vrsqrt.f32 %v177_v48 }
 0x242   :  { %v280_v49 = vpop.eup %279 }
 0x243   :  { %v180_v50 = vmul.f32 %v280_v49, %v166_v37 }
 0x245   :  { %v189_v53 = vmul.f32 %v224_v51, %v180_v50 }
 0x246   :  { %v282_v52 = vpop.eup %281 }
 0x247   :  { %v181_v54 = vmul.f32 %v282_v52, %v167_v41  ;;  %v198_v57 = vadd.f32 %v225_v55, %v189_v53 }
 0x249   :  { %v190_v56 = vmul.f32 %v224_v51, %v181_v54 }
 0x24b   :  { %v199_v58 = vadd.f32 %v225_v55, %v190_v56 }
 0x24d   :  { %v233_v59 = vpack.c.bf16 %v199_v58, %v198_v57 }
 0x24f   :  { %234 = vst [vmem:[%s359_s5] sm:$0xff] %v233_v59  }

</bundles_post_ra>
